<compile_context>
chip_gen: v6e
topology: v6e:2x2x1
jax: 0.10.0
libtpu: 0.0.40
codegen_flags: <defaults>
</compile_context>

<pallas_src>
import functools

import jax
import jax.numpy as jnp
from jax.experimental import pallas as pl
from jax.experimental.pallas import tpu as pltpu

IN_FEATURES = 1000
OUT_FEATURES = 2000
K_PAD = 1024  # IN_FEATURES padded up to a multiple of 128 (lane-aligned)


def _linear_kernel(x_ref, w_ref, b_ref, o_ref):
    """One (i, j) grid step of y = x @ W + b.

    x_ref : (tm, Kp)   full-K tile of x (bf16)
    w_ref : (Kp, tn)   N-slab of W (bf16)
    b_ref : (1, tn)    N-slab of bias (f32)
    o_ref : (tm, tn)   output tile (f32)
    """
    acc = jnp.dot(x_ref[...], w_ref[...], preferred_element_type=jnp.float32)
    o_ref[...] = (acc + b_ref[...]).astype(o_ref.dtype)


def prepare_params(w, b, *, tn=1024, kp=K_PAD):
    """One-time weight prep: pad K->kp, pad N to a multiple of tn, cast W to bf16.

    w : [K, N] fp32 (note: transposed vs PyTorch's [out, in] storage)
    b : [N]    fp32
    """
    K, N = w.shape
    pad_k = kp - K
    pad_n = (-N) % tn
    wp = jnp.pad(w, ((0, pad_k), (0, pad_n)))  # zero-filled pads contribute 0
    bp = jnp.pad(b, ((0, pad_n),))
    return wp.astype(jnp.bfloat16), bp[None, :].astype(jnp.float32)


@functools.partial(jax.jit, static_argnames=("tm", "tn", "n_out"))
def linear_pallas(x, wp, bp, *, tm=8, tn=1024, n_out=OUT_FEATURES):
    """y = x @ wp + bp via Pallas.  x: [B, K] f32, wp: [Kp, Np] bf16, bp: [1, Np] f32."""
    B, K = x.shape
    Kp, Np = wp.shape
    assert K <= Kp and Np % tn == 0

    # Pad batch up to tm and K up to Kp (tiny per-call cost), then cast to bf16.
    pad_m = (-B) % tm
    pad_k = Kp - K
    xp = jnp.pad(x, ((0, pad_m), (0, pad_k))) if (pad_m or pad_k) else x
    xp = xp.astype(jnp.bfloat16)
    Mp = xp.shape[0]

    grid = (Mp // tm, Np // tn)

    cost = pl.CostEstimate(
        flops=2 * Mp * Kp * Np,
        transcendentals=0,
        bytes_accessed=(xp.size * 2 + wp.size * 2 + bp.size * 4 + Mp * Np * 4),
    )

    out = pl.pallas_call(
        _linear_kernel,
        out_shape=jax.ShapeDtypeStruct((Mp, Np), jnp.float32),
        grid_spec=pltpu.PrefetchScalarGridSpec(
            num_scalar_prefetch=0,
            grid=grid,
            in_specs=[
                pl.BlockSpec((tm, Kp), lambda i, j: (i, 0)),   # x: full K
                pl.BlockSpec((Kp, tn), lambda i, j: (0, j)),   # W: full K, N slab
                pl.BlockSpec((1, tn), lambda i, j: (0, j)),    # bias slab
            ],
            out_specs=pl.BlockSpec((tm, tn), lambda i, j: (i, j)),
        ),
        compiler_params=pltpu.CompilerParams(
            dimension_semantics=("parallel", "parallel"),
        ),
        cost_estimate=cost,
    )(xp, wp, bp)

    # Kept only to honor the nn.Linear output contract; fuse/slice in the
    # consumer if the padded (Mp, Np) slab is acceptable downstream.
    return out[:B, :n_out]


def init_params(key):
    """Deterministic init matching torch.nn.Linear(1000, 2000) shapes."""
    kw, kb = jax.random.split(key)
    bound = 1.0 / (IN_FEATURES ** 0.5)
    # PyTorch stores weight as [out, in]; keep [in, out] for the kernel.
    w = jax.random.uniform(
        kw, (IN_FEATURES, OUT_FEATURES), jnp.float32, -bound, bound
    )
    b = jax.random.uniform(kb, (OUT_FEATURES,), jnp.float32, -bound, bound)
    return w, b


if __name__ == "__main__":
    key = jax.random.PRNGKey(0)
    kx, kp = jax.random.split(key)

    batch = 8
    x = jax.random.normal(kx, (batch, IN_FEATURES), jnp.float32)
    w, b = init_params(kp)

    # One-time weight prep (K/N padding + bf16 cast) outside the per-call path.
    wp, bp = prepare_params(w, b, tn=1024)

    y = linear_pallas(x, wp, bp)
    jax.block_until_ready(y)

    assert y.shape == (batch, OUT_FEATURES)

    # Tight check against a matched-precision reference (bf16 inputs, f32 acc).
    y_bf16_ref = jnp.dot(
        x.astype(jnp.bfloat16),
        w.astype(jnp.bfloat16),
        preferred_element_type=jnp.float32,
    ) + b
    assert jnp.allclose(y, y_bf16_ref, atol=1e-4, rtol=1e-4)

    # Loose check against the fp32 PyTorch-equivalent reference (bf16 rounding
    # of x and W gives ~1e-2 relative deviation — known/accepted per review).
    y_f32_ref = x @ w + b
    assert jnp.allclose(y, y_f32_ref, atol=3e-2, rtol=3e-2)

    print("KERNEL_OK")
</pallas_src>

<mosaic_0001>
module attributes {stable_mosaic.version = 11 : i64} {
  func.func @_linear_kernel(%arg0: i32, %arg1: i32, %arg2: memref<8x1024xbf16, #tpu.memory_space<vmem>>, %arg3: memref<1024x1024xbf16, #tpu.memory_space<vmem>>, %arg4: memref<1x1024xf32, #tpu.memory_space<vmem>>, %arg5: memref<8x1024xf32, #tpu.memory_space<vmem>>) attributes {dimension_semantics = [#tpu.dimension_semantics<parallel>, #tpu.dimension_semantics<parallel>], iteration_bounds = array<i64: 1, 2>, scalar_prefetch = 0 : i64, scratch_operands = 0 : i64, tpu.core_type = #tpu.core_type<tc>, window_params = [{transform_indices = @transform_0, window_bounds = array<i64: 8, 1024>}, {transform_indices = @transform_1, window_bounds = array<i64: 1024, 1024>}, {transform_indices = @transform_2, window_bounds = array<i64: 1, 1024>}, {transform_indices = @transform_3, window_bounds = array<i64: 8, 1024>}]} {
    %c0 = arith.constant 0 : index
    %c0_0 = arith.constant 0 : index
    %0 = vector.load %arg2[%c0, %c0_0] : memref<8x1024xbf16, #tpu.memory_space<vmem>>, vector<8x1024xbf16>
    %c0_1 = arith.constant 0 : index
    %c0_2 = arith.constant 0 : index
    %1 = vector.load %arg3[%c0_1, %c0_2] : memref<1024x1024xbf16, #tpu.memory_space<vmem>>, vector<1024x1024xbf16>
    %cst = arith.constant dense<0.000000e+00> : vector<8x1024xf32>
    %2 = tpu.matmul %0, %1, %cst {dimension_numbers = #tpu.dot_dimension_numbers<[1], [0], [0], [1], [0, 0, 1, 1], [], []>} : vector<8x1024xbf16>, vector<1024x1024xbf16>, vector<8x1024xf32> -> vector<8x1024xf32>
    %c0_3 = arith.constant 0 : index
    %c0_4 = arith.constant 0 : index
    %3 = vector.load %arg4[%c0_3, %c0_4] : memref<1x1024xf32, #tpu.memory_space<vmem>>, vector<1x1024xf32>
    %4 = vector.broadcast %3 : vector<1x1024xf32> to vector<8x1024xf32>
    %5 = arith.addf %2, %4 : vector<8x1024xf32>
    %c0_5 = arith.constant 0 : index
    %c0_6 = arith.constant 0 : index
    %6 = vector.load %arg5[%c0_5, %c0_6] : memref<8x1024xf32, #tpu.memory_space<vmem>>, vector<8x1024xf32>
    tpu.vector_store %arg5[%c0_5, %c0_6], %5 {strides = array<i32>} : memref<8x1024xf32, #tpu.memory_space<vmem>>, vector<8x1024xf32>,
    return
  }
  func.func @transform_0(%arg0: i32, %arg1: i32) -> (i32, i32) {
    %c0_i32 = arith.constant 0 : i32
    %c0_i32_0 = arith.constant 0 : i32
    return %arg0, %c0_i32 : i32, i32
  }
  func.func @transform_1(%arg0: i32, %arg1: i32) -> (i32, i32) {
    %c0_i32 = arith.constant 0 : i32
    %c0_i32_0 = arith.constant 0 : i32
    return %c0_i32, %arg1 : i32, i32
  }
  func.func @transform_2(%arg0: i32, %arg1: i32) -> (i32, i32) {
    %c0_i32 = arith.constant 0 : i32
    %c0_i32_0 = arith.constant 0 : i32
    return %c0_i32, %arg1 : i32, i32
  }
  func.func @transform_3(%arg0: i32, %arg1: i32) -> (i32, i32) {
    %c0_i32 = arith.constant 0 : i32
    return %arg0, %arg1 : i32, i32
  }
}

</mosaic_0001>

<bundles_post_ra>
// kernel: linear_pallas.1
= control target key start
LH: loop header
LB: loop body
LE: loop exit
PB: predicated region body
PF: predicated region fallthrough
CT: control target
= control target key end

     0   :  { %s5828_s0 = inlined_call_operand.vmem [shape: bf16[8,1024], index: 0, kind: input, shape index: {}]   ;;  %s5829_s1 = inlined_call_operand.hbm [shape: bf16[1024,2048], index: 1, kind: input, shape index: {}]   ;;  %s5830_s2 = inlined_call_operand.hbm [shape: f32[1,2048], index: 2, kind: input, shape index: {}]   ;;  %s5831_s3 = inlined_call_operand.hbm [shape: f32[8,2048], index: 3, kind: output, shape index: {}]  }
   0x1   :  { %5833 = sst [smem:[#allocation12_spill]] %s5829_s1 }
   0x2   :  { %8 = vsyncpa [#allocation3], 0 }
   0x3   :  { %10 = vsyncpa [#allocation3 + $0x1], 0 }
   0x4   :  { %11 = vsyncpa [#allocation6], 0 }
   0x5   :  { %13 = vsyncpa [#allocation6 + $0x1], 0 }
   0x6   :  { %14 = vsyncpa [#allocation4], 0 }
   0x7   :  { %16 = vsyncpa [#allocation4 + $0x1], 0  ;;  %s5000_s12 = smov 0   ;;  %s5002_s13 = smov 0  }
   0x8   :  { %s5004_s14 = smov 0   ;;  %s5006_s15 = smov 0  }
   0x9   :  { %s5008_s16 = smov 0   ;;  %s5010_s17 = smov 0  }
   0xa LB: > { %s4210_s18 = sadd.s32 4294967295, %s4972_s17   ;;  %s4211_s19 = sadd.s32 4294967294, %s4972_s17   ;;  %s4972_s17 = sphi %s5010_s17, %s22_s17   ;;  %s4968_s16 = sphi %s5008_s16, %s5847_s16   ;;  %s4964_s15 = sphi %s5006_s15, %s5846_s15   ;;  %s4960_s14 = sphi %s5004_s14, %s5845_s14   ;;  %s4956_s13 = sphi %s5002_s13, %s5844_s13   ;;  %s4952_s12 = sphi %s5000_s12, %s5843_s12  }
   0xb   : > { %s31_s20 = sadd.s32 1, %s4968_s16  ;;  %s67_s21 = sadd.s32 1, %s4960_s14 }
   0xc   : > { %p32_p0 = scmp.ge.s32.totalorder %s31_s20, 2  ;;  %p74_p1 = scmp.ne.s32.totalorder %s4960_s14, %s4956_s13 }
   0xd   : > { %p75_p2 = scmp.eq.s32.totalorder %s4972_s17, 0  ;;  %p80_p3 = scmp.ne.s32.totalorder %s4956_s13, %s4952_s12 }
   0xe   : > { %s5849_s20 = smov (%p32_p0, %s31_s20), 0  ;;  %p81_p5 = scmp.eq.s32.totalorder %s4210_s18, 0 }
   0xf   : > { %5834 = sst [smem:[#allocation11_spill]] %s5849_s20  ;;  %p5041_p4 = por %p75_p2, %p74_p1 }
  0x10   : > { %s64_s23 = ssub.s32 %s4968_s16, %s5849_s20  ;;  %p132_p6 = scmp.eq.s32.totalorder %s4210_s18, 1 }
  0x11   : > { %p65_p7 = scmp.eq.s32.totalorder %s64_s23, 0  ;;  %p5047_p8 = por %p81_p5, %p80_p3 }
  0x12   : > { %p5051_p9 = por %p132_p6, %p74_p1  ;;  %p138_p10 = scmp.eq.s32.totalorder %s4211_s19, 1 }
  0x13   : > { %s5056_s26 = scalar_select %p65_p7, %s4960_s14, %s67_s21  }
  0x14   : > { %p5058_p11 = por %p138_p10, %p80_p3  ;;  %p4214_p12 = scmp.ge.s32.totalorder %s4972_s17, 2 }
  0x15   : > { %p4770_p13 = scmp.lt.s32.totalorder %s4972_s17, 2  ;;  %s5065_s28 = sand.u32 1, %s4960_s14  }
  0x16   : > { %s4215_s29 = sshll.u32 %s5065_s28, 12  ;;  %s4750_s30 = sshll.u32 %s4968_s16, 9 }
  0x17   : > { %s5839_s1 = sld [smem:[#allocation12_spill]]  ;;  %s170_s7 = scalar_lea.vmem [#allocation2], %s4215_s29 }
  0x18   : > { %s177_s8 = sshll.u32 %s170_s7, 4  ;;  %p5074_p0 = pnand %p4770_p13, %p5041_p4  ;;  %s178_s8 = int_to_ptr.vmem [resolvable:$true] %s177_s8 }
  0x19   : > { %s167_s10 = scalar_lea.sflag [#allocation3], %s5065_s28  ;;  %s4845_s11 = scalar_lea.vmem %s178_s8, 65536 }
  0x1a   : > { %p4834_p1 = pneg %p5074_p0  ;;  %p4846_p2 = scmp.ne.s32.totalorder %s178_s8, %s4845_s11 }
  0x1b   : > { %s4974_s18 = smov [#allocation2]  }
  0x1c   : > { %p4848_p3 = pnand %p4846_p2, %p4834_p1  ;;  %s4850_s19 = sshll.u32 %s4974_s18, 4  ;;  %s4851_s19 = int_to_ptr.vmem [resolvable:$false] %s4850_s19 }
  0x1d   : > { %s176_s6 = scalar_lea.hbm %s5839_s1, %s4750_s30  ;;  %s4852_s21 = scalar_lea.vmem %s4851_s19, 131072 }
  0x1e   : > { %p4849_p5 = pneg %p4848_p3  ;;  %p4853_p6 = scmp.lt.s32.totalorder %s178_s8, %s4851_s19 }
  0x1f   : > { %p4854_p4 = scmp.lt.s32.totalorder %s4852_s21, %s4845_s11 }
  0x21   : > { %p4855_p7 = por %p4854_p4, %p4853_p6 }
  0x23   : > { %p4856_p10 = pnand %p4855_p7, %p4849_p5 }
  0x25   : > { %4859 = shalt.err (!%p4856_p10)
}
  0x26   : > { %s4975_s22 = smov 1024   ;;  %s4976_s23 = smov 512  }
  0x27   : > { %s4977_s29 = smov 32   ;;  %p4221_p13 = scmp.ge.s32.totalorder %s4972_s17, 1 }
  0x28   : > { %4762 = dma.hbm_to_vmem [thread:$0]  (!%p5074_p0), %s176_s6, 65536, %s178_s8, %s167_s10, %s4975_s22, %s4976_s23, %s4977_s29  }
  0x29   : > { %p204_p2 = scmp.lt.s32.totalorder %s4972_s17, 3  ;;  %s4218_s30 = sshll.u32 %s5065_s28, 3 }
  0x2a   : > { %s4751_s5 = sshll.u32 %s4968_s16, 7  ;;  %s191_s7 = scalar_lea.vmem [#allocation5], %s4218_s30 }
  0x2b   : > { %p5089_p3 = pnand %p4221_p13, %p204_p2  ;;  %s199_s11 = sshll.u32 %s191_s7, 4  ;;  %s200_s11 = int_to_ptr.vmem [resolvable:$true] %s199_s11 }
  0x2c   : > { %s197_s21 = scalar_lea.hbm %s5830_s2, %s4751_s5  ;;  %s188_s1 = scalar_lea.sflag [#allocation6], %s5065_s28 }
  0x2d   : > { %s4873_s20 = scalar_lea.vmem %s200_s11, 128  ;;  %s4978_s6 = smov [#allocation5]  }
  0x2e   : > { %p4874_p5 = scmp.ne.s32.totalorder %s200_s11, %s4873_s20  ;;  %s4878_s8 = sshll.u32 %s4978_s6, 4  ;;  %s4879_s8 = int_to_ptr.vmem [resolvable:$false] %s4878_s8 }
  0x2f   : > { %s4880_s10 = scalar_lea.vmem %s4879_s8, 256  ;;  %p4881_p7 = scmp.lt.s32.totalorder %s200_s11, %s4879_s8 }
  0x30   : > { %p4876_p6 = pnand %p4874_p5, %p4834_p1  ;;  %p4882_p10 = scmp.lt.s32.totalorder %s4880_s10, %s4873_s20 }
  0x32   : > { %p4877_p4 = pneg %p4876_p6  ;;  %p4883_p13 = por %p4882_p10, %p4881_p7 }
  0x34   : > { %p4884_p2 = pnand %p4883_p13, %p4877_p4 }
  0x36   : > { %4887 = shalt.err (!%p4884_p2)
}
  0x37   : > { %4765 = dma.hbm_to_vmem [thread:$0]  (!%p5074_p0), %s197_s21, 128, %s200_s11, %s188_s1  }
  0x38   : > { %208 = sbr.rel (%p5089_p3) target bundleno = 795 (0x31b), region = 32  ;;  %s5106_s28 = sand.u32 (!%p5089_p3), 1, %s4956_s13  }
  0x39   : > { %s4222_s22 = sshll.u32 (!%p5089_p3), %s5106_s28, 12  ;;  %s211_s23 = scalar_lea.sflag (!%p5089_p3), [#allocation3], %s5106_s28 }
  0x3a   : > { %s5110_s29 = scalar_lea.vmem (!%p5089_p3), [#allocation2], %s4222_s22 }
  0x3d   : > { %4939 = dma.done.wait (%p5047_p8), %s211_s23, 65536  }
  0x3e   : > { %4941 = vsyncadd (%p5047_p8), %s211_s23, 4294901760  ;;  %s4223_s1 = sshll.u32 %s5106_s28, 3  ;;  %s220_s20 = scalar_lea.sflag [#allocation6], %s5106_s28 }
  0x3f   : > { %s5118_s9 = scalar_lea.vmem [#allocation5], %s4223_s1 }
  0x40   : > { %4943 = dma.done.wait (%p5047_p8), %s220_s20, 128  }
  0x41   : > { %4945 = vsyncadd (%p5047_p8), %s220_s20, 4294967168  ;;  %v324_v0 = vld [vmem:[%s5110_s29 + $0x1c0] sm:$0xff]  ;;  %v5160_v54 = vld [vmem:[%s5828_s0 + $0x8] sm:$0xff]  ;;  %s4224_s21 = sshll.u32 %s5106_s28, 6  ;;  %s4752_s8 = sshll.u32 %s4964_s15, 10 }
  0x42   : > { %v328_v1 = vld [vmem:[%s5110_s29 + $0x1e0] sm:$0xff]  ;;  %v5170_v59 = vcombine.high %v5160_v54, %v5160_v54  ;;  %s5558_s6 = scalar_lea.vmem [#allocation7], %s4224_s21  ;;  %s4075_s15 = scalar_lea.sflag [#allocation4], %s5106_s28 }
  0x43   : > { %v452_v2 = vld [vmem:[%s5110_s29 + $0x5c0] sm:$0xff]  ;;  %v4290_v3 = vcombine.high %v324_v0, %v328_v1  ;;  %v4289_v5 = vcombine.low %v324_v0, %v328_v1  ;;  %s4091_s10 = sshll.u32 %s5558_s6, 4  ;;  %s4979_s20 = smov [#allocation7]   ;;  %s5781_s10 = int_to_ptr.vmem [resolvable:$true] %s4091_s10 }
  0x44   : > { %v456_v4 = vld [vmem:[%s5110_s29 + $0x5e0] sm:$0xff]  ;;  %3483 = vmatprep.mubr.bf16.mxu1 %v5170_v59  ;;  %s4888_s1 = scalar_lea.vmem %s5781_s10, 1024 }
  0x45   : > { %v316_v6 = vld [vmem:[%s5110_s29 + $0x180] sm:$0xff]  ;;  %v4418_v8 = vcombine.high %v452_v2, %v456_v4  ;;  %v4417_v9 = vcombine.low %v452_v2, %v456_v4  ;;  %3410 = vmatprep.subr.bf16.mxu0 %v4290_v3  ;;  %p4889_p8 = scmp.ne.s32.totalorder %s5781_s10, %s4888_s1 }
  0x46   : > { %v320_v7 = vld [vmem:[%s5110_s29 + $0x1a0] sm:$0xff]  ;;  %3411 = vmatpush1.bf16.msra.mxu0 %v4289_v5 }
  0x47   : > { %v4282_v10 = vcombine.high %v316_v6, %v320_v7  ;;  %v444_v11 = vld [vmem:[%s5110_s29 + $0x580] sm:$0xff]  ;;  %3451 = vmatprep.subr.bf16.mxu1 %v4418_v8  ;;  %v4281_v18 = vcombine.low %v316_v6, %v320_v7  ;;  %p4890_p0 = pnand %p4889_p8, %p5051_p9 }
  0x48   : > { %v448_v12 = vld [vmem:[%s5110_s29 + $0x5a0] sm:$0xff]  ;;  %3452 = vmatpush1.bf16.msra.mxu1 %v4417_v9 }
  0x49   : > { %v308_v13 = vld [vmem:[%s5110_s29 + $0x140] sm:$0xff]  ;;  %v4410_v14 = vcombine.high %v444_v11, %v448_v12  ;;  %3412 = vmatprep.subr.bf16.mxu0 %v4282_v10  ;;  %v4409_v19 = vcombine.low %v444_v11, %v448_v12  ;;  %p4891_p1 = pneg %p4890_p0 }
  0x4a   : > { %v312_v15 = vld [vmem:[%s5110_s29 + $0x160] sm:$0xff]  ;;  %3413 = vmatpush1.bf16.msra.mxu0 %v4281_v18 }
  0x4b   : > { %v436_v16 = vld [vmem:[%s5110_s29 + $0x540] sm:$0xff]  ;;  %v4274_v20 = vcombine.high %v308_v13, %v312_v15  ;;  %3453 = vmatprep.subr.bf16.mxu1 %v4410_v14  ;;  %v4273_v26 = vcombine.low %v308_v13, %v312_v15 }
  0x4c   : > { %v440_v17 = vld [vmem:[%s5110_s29 + $0x560] sm:$0xff]  ;;  %3454 = vmatpush1.bf16.msra.mxu1 %v4409_v19 }
  0x4d   : > { %v4402_v21 = vcombine.high %v436_v16, %v440_v17  ;;  %v300_v22 = vld [vmem:[%s5110_s29 + $0x100] sm:$0xff]  ;;  %3414 = vmatprep.subr.bf16.mxu0 %v4274_v20  ;;  %v4401_v27 = vcombine.low %v436_v16, %v440_v17 }
  0x4e   : > { %v304_v23 = vld [vmem:[%s5110_s29 + $0x120] sm:$0xff]  ;;  %3415 = vmatpush1.bf16.msra.mxu0 %v4273_v26 }
  0x4f   : > { %v428_v24 = vld [vmem:[%s5110_s29 + $0x500] sm:$0xff]  ;;  %v4266_v28 = vcombine.high %v300_v22, %v304_v23  ;;  %3455 = vmatprep.subr.bf16.mxu1 %v4402_v21  ;;  %v4265_v34 = vcombine.low %v300_v22, %v304_v23 }
  0x50   : > { %v432_v25 = vld [vmem:[%s5110_s29 + $0x520] sm:$0xff]  ;;  %3456 = vmatpush1.bf16.msra.mxu1 %v4401_v27 }
  0x51   : > { %v4394_v29 = vcombine.high %v428_v24, %v432_v25  ;;  %v292_v30 = vld [vmem:[%s5110_s29 + $0xc0] sm:$0xff]  ;;  %3416 = vmatprep.subr.bf16.mxu0 %v4266_v28  ;;  %v4393_v35 = vcombine.low %v428_v24, %v432_v25 }
  0x52   : > { %v296_v31 = vld [vmem:[%s5110_s29 + $0xe0] sm:$0xff]  ;;  %3417 = vmatpush1.bf16.msra.mxu0 %v4265_v34 }
  0x53   : > { %v420_v32 = vld [vmem:[%s5110_s29 + $0x4c0] sm:$0xff]  ;;  %v4258_v36 = vcombine.high %v292_v30, %v296_v31  ;;  %3457 = vmatprep.subr.bf16.mxu1 %v4394_v29  ;;  %v4257_v42 = vcombine.low %v292_v30, %v296_v31 }
  0x54   : > { %v424_v33 = vld [vmem:[%s5110_s29 + $0x4e0] sm:$0xff]  ;;  %3458 = vmatpush1.bf16.msra.mxu1 %v4393_v35 }
  0x55   : > { %v4386_v37 = vcombine.high %v420_v32, %v424_v33  ;;  %v284_v38 = vld [vmem:[%s5110_s29 + $0x80] sm:$0xff]  ;;  %3418 = vmatprep.subr.bf16.mxu0 %v4258_v36  ;;  %v4385_v43 = vcombine.low %v420_v32, %v424_v33 }
  0x56   : > { %v288_v39 = vld [vmem:[%s5110_s29 + $0xa0] sm:$0xff]  ;;  %3419 = vmatpush1.bf16.msra.mxu0 %v4257_v42 }
  0x57   : > { %v412_v40 = vld [vmem:[%s5110_s29 + $0x480] sm:$0xff]  ;;  %v4250_v44 = vcombine.high %v284_v38, %v288_v39  ;;  %3459 = vmatprep.subr.bf16.mxu1 %v4386_v37  ;;  %v4249_v50 = vcombine.low %v284_v38, %v288_v39 }
  0x58   : > { %v416_v41 = vld [vmem:[%s5110_s29 + $0x4a0] sm:$0xff]  ;;  %3460 = vmatpush1.bf16.msra.mxu1 %v4385_v43 }
  0x59   : > { %v4378_v45 = vcombine.high %v412_v40, %v416_v41  ;;  %v276_v46 = vld [vmem:[%s5110_s29 + $0x40] sm:$0xff]  ;;  %3420 = vmatprep.subr.bf16.mxu0 %v4250_v44  ;;  %v4377_v51 = vcombine.low %v412_v40, %v416_v41 }
  0x5a   : > { %v280_v47 = vld [vmem:[%s5110_s29 + $0x60] sm:$0xff]  ;;  %3421 = vmatpush1.bf16.msra.mxu0 %v4249_v50 }
  0x5b   : > { %v404_v48 = vld [vmem:[%s5110_s29 + $0x440] sm:$0xff]  ;;  %v4242_v52 = vcombine.high %v276_v46, %v280_v47  ;;  %3461 = vmatprep.subr.bf16.mxu1 %v4378_v45  ;;  %v4241_v62 = vcombine.low %v276_v46, %v280_v47 }
  0x5c   : > { %v408_v49 = vld [vmem:[%s5110_s29 + $0x460] sm:$0xff]  ;;  %3462 = vmatpush1.bf16.msra.mxu1 %v4377_v51 }
  0x5d   : > { %v5155_v53 = vld [vmem:[%s5828_s0] sm:$0xff]  ;;  %v4370_v55 = vcombine.high %v404_v48, %v408_v49  ;;  %3422 = vmatprep.subr.bf16.mxu0 %v4242_v52  ;;  %v4369_v63 = vcombine.low %v404_v48, %v408_v49 }
  0x5e   : > { %v268_v56 = vld [vmem:[%s5110_s29] sm:$0xff]  ;;  %v5166_v58 = vcombine.high %v5155_v53, %v5155_v53  ;;  %3423 = vmatpush1.bf16.msra.mxu0 %v4241_v62 }
  0x5f   : > { %v272_v57 = vld [vmem:[%s5110_s29 + $0x20] sm:$0xff]  ;;  %3463 = vmatprep.subr.bf16.mxu1 %v4370_v55 }
  0x60   : > { %v396_v60 = vld [vmem:[%s5110_s29 + $0x400] sm:$0xff]  ;;  %3442 = vmatprep.mubr.bf16.mxu0 %v5166_v58  ;;  %v4234_v0 = vcombine.high %v268_v56, %v272_v57  ;;  %v4233_v6 = vcombine.low %v268_v56, %v272_v57  ;;  %3464 = vmatpush1.bf16.msra.mxu1 %v4369_v63 }
  0x61   : > { %v400_v61 = vld [vmem:[%s5110_s29 + $0x420] sm:$0xff] }
  0x62   : > { %v4362_v1 = vcombine.high %v396_v60, %v400_v61  ;;  %v388_v2 = vld [vmem:[%s5110_s29 + $0x3c0] sm:$0xff]  ;;  %3424 = vmatprep.subr.bf16.mxu0 %v4234_v0  ;;  %v4361_v7 = vcombine.low %v396_v60, %v400_v61 }
  0x63   : > { %v392_v3 = vld [vmem:[%s5110_s29 + $0x3e0] sm:$0xff]  ;;  %3425 = vmatpush1.bf16.msra.mxu0 %v4233_v6 }
  0x64   : > { %v516_v4 = vld [vmem:[%s5110_s29 + $0x7c0] sm:$0xff]  ;;  %v4354_v8 = vcombine.high %v388_v2, %v392_v3  ;;  %3465 = vmatprep.subr.bf16.mxu1 %v4362_v1  ;;  %v4353_v14 = vcombine.low %v388_v2, %v392_v3 }
  0x65   : > { %v520_v5 = vld [vmem:[%s5110_s29 + $0x7e0] sm:$0xff]  ;;  %3466 = vmatpush1.bf16.msra.mxu1 %v4361_v7 }
  0x66   : > { %v4482_v9 = vcombine.high %v516_v4, %v520_v5  ;;  %v380_v10 = vld [vmem:[%s5110_s29 + $0x380] sm:$0xff]  ;;  %3426 = vmatprep.subr.bf16.mxu0 %v4354_v8  ;;  %v4481_v15 = vcombine.low %v516_v4, %v520_v5 }
  0x67   : > { %v384_v11 = vld [vmem:[%s5110_s29 + $0x3a0] sm:$0xff]  ;;  %3427 = vmatpush2.bf16.msra.mxu0 %v4353_v14 }
  0x68   : > { %v508_v12 = vld [vmem:[%s5110_s29 + $0x780] sm:$0xff]  ;;  %v4346_v16 = vcombine.high %v380_v10, %v384_v11  ;;  %3467 = vmatprep.subr.bf16.mxu1 %v4482_v9  ;;  %v4345_v22 = vcombine.low %v380_v10, %v384_v11 }
  0x69   : > { %v512_v13 = vld [vmem:[%s5110_s29 + $0x7a0] sm:$0xff]  ;;  %3468 = vmatpush2.bf16.msra.mxu1 %v4481_v15 }
  0x6a   : > { %v4474_v17 = vcombine.high %v508_v12, %v512_v13  ;;  %v372_v18 = vld [vmem:[%s5110_s29 + $0x340] sm:$0xff]  ;;  %3428 = vmatprep.subr.bf16.mxu0 %v4346_v16  ;;  %v4473_v23 = vcombine.low %v508_v12, %v512_v13  ;;  %v5216_v16 = vcombine.low %v5155_v53, %v5155_v53  ;;  %v5232_v53 = vld [vmem:[%s5828_s0 + $0x18] sm:$0xff] }
  0x6b   : > { %v376_v19 = vld [vmem:[%s5110_s29 + $0x360] sm:$0xff]  ;;  %3429 = vmatpush2.bf16.msra.mxu0 %v4345_v22 }
  0x6c   : > { %v500_v20 = vld [vmem:[%s5110_s29 + $0x740] sm:$0xff]  ;;  %v4338_v24 = vcombine.high %v372_v18, %v376_v19  ;;  %3469 = vmatprep.subr.bf16.mxu1 %v4474_v17  ;;  %v4337_v30 = vcombine.low %v372_v18, %v376_v19  ;;  %v5223_v19 = vld [vmem:[%s5828_s0 + $0x10] sm:$0xff] }
  0x6d   : > { %v504_v21 = vld [vmem:[%s5110_s29 + $0x760] sm:$0xff]  ;;  %3470 = vmatpush2.bf16.msra.mxu1 %v4473_v23 }
  0x6e   : > { %v4466_v25 = vcombine.high %v500_v20, %v504_v21  ;;  %v364_v26 = vld [vmem:[%s5110_s29 + $0x300] sm:$0xff]  ;;  %3430 = vmatprep.subr.bf16.mxu0 %v4338_v24  ;;  %v4465_v31 = vcombine.low %v500_v20, %v504_v21  ;;  %v5227_v20 = vcombine.low %v5160_v54, %v5160_v54  ;;  %v5238_v54 = vcombine.high %v5223_v19, %v5223_v19 }
  0x6f   : > { %v368_v27 = vld [vmem:[%s5110_s29 + $0x320] sm:$0xff]  ;;  %3431 = vmatpush2.bf16.msra.mxu0 %v4337_v30 }
  0x70   : > { %v492_v28 = vld [vmem:[%s5110_s29 + $0x700] sm:$0xff]  ;;  %v4330_v32 = vcombine.high %v364_v26, %v368_v27  ;;  %3471 = vmatprep.subr.bf16.mxu1 %v4466_v25  ;;  %v4329_v38 = vcombine.low %v364_v26, %v368_v27 }
  0x71   : > { %v496_v29 = vld [vmem:[%s5110_s29 + $0x720] sm:$0xff]  ;;  %3472 = vmatpush2.bf16.msra.mxu1 %v4465_v31 }
  0x72   : > { %v4458_v33 = vcombine.high %v492_v28, %v496_v29  ;;  %v356_v34 = vld [vmem:[%s5110_s29 + $0x2c0] sm:$0xff]  ;;  %3432 = vmatprep.subr.bf16.mxu0 %v4330_v32  ;;  %v4457_v39 = vcombine.low %v492_v28, %v496_v29  ;;  %v5245_v29 = vcombine.high %v5232_v53, %v5232_v53 }
  0x73   : > { %v360_v35 = vld [vmem:[%s5110_s29 + $0x2e0] sm:$0xff]  ;;  %3433 = vmatpush2.bf16.msra.mxu0 %v4329_v38 }
  0x74   : > { %v484_v36 = vld [vmem:[%s5110_s29 + $0x6c0] sm:$0xff]  ;;  %v4322_v40 = vcombine.high %v356_v34, %v360_v35  ;;  %3473 = vmatprep.subr.bf16.mxu1 %v4458_v33  ;;  %v4321_v46 = vcombine.low %v356_v34, %v360_v35 }
  0x75   : > { %v488_v37 = vld [vmem:[%s5110_s29 + $0x6e0] sm:$0xff]  ;;  %3474 = vmatpush2.bf16.msra.mxu1 %v4457_v39 }
  0x76   : > { %v4450_v41 = vcombine.high %v484_v36, %v488_v37  ;;  %v348_v42 = vld [vmem:[%s5110_s29 + $0x280] sm:$0xff]  ;;  %3434 = vmatprep.subr.bf16.mxu0 %v4322_v40  ;;  %v4449_v47 = vcombine.low %v484_v36, %v488_v37 }
  0x77   : > { %v352_v43 = vld [vmem:[%s5110_s29 + $0x2a0] sm:$0xff]  ;;  %3435 = vmatpush2.bf16.msra.mxu0 %v4321_v46 }
  0x78   : > { %v476_v44 = vld [vmem:[%s5110_s29 + $0x680] sm:$0xff]  ;;  %v4314_v48 = vcombine.high %v348_v42, %v352_v43  ;;  %3475 = vmatprep.subr.bf16.mxu1 %v4450_v41  ;;  %v4313_v56 = vcombine.low %v348_v42, %v352_v43 }
  0x79   : > { %v480_v45 = vld [vmem:[%s5110_s29 + $0x6a0] sm:$0xff]  ;;  %3476 = vmatpush2.bf16.msra.mxu1 %v4449_v47 }
  0x7a   : > { %v4442_v49 = vcombine.high %v476_v44, %v480_v45  ;;  %v340_v50 = vld [vmem:[%s5110_s29 + $0x240] sm:$0xff]  ;;  %3436 = vmatprep.subr.bf16.mxu0 %v4314_v48  ;;  %v4441_v57 = vcombine.low %v476_v44, %v480_v45 }
  0x7b   : > { %v344_v51 = vld [vmem:[%s5110_s29 + $0x260] sm:$0xff]  ;;  %3437 = vmatpush2.bf16.msra.mxu0 %v4313_v56 }
  0x7c   : > { %v468_v52 = vld [vmem:[%s5110_s29 + $0x640] sm:$0xff]  ;;  %v4306_v60 = vcombine.high %v340_v50, %v344_v51  ;;  %3477 = vmatprep.subr.bf16.mxu1 %v4442_v49  ;;  %v4305_v2 = vcombine.low %v340_v50, %v344_v51 }
  0x7d   : > { %v472_v55 = vld [vmem:[%s5110_s29 + $0x660] sm:$0xff]  ;;  %3478 = vmatpush2.bf16.msra.mxu1 %v4441_v57 }
  0x7e   : > { %v4434_v61 = vcombine.high %v468_v52, %v472_v55  ;;  %v332_v62 = vld [vmem:[%s5110_s29 + $0x200] sm:$0xff]  ;;  %3438 = vmatprep.subr.bf16.mxu0 %v4306_v60  ;;  %v4433_v3 = vcombine.low %v468_v52, %v472_v55 }
  0x7f   : > { %v336_v63 = vld [vmem:[%s5110_s29 + $0x220] sm:$0xff]  ;;  %3439 = vmatpush2.bf16.msra.mxu0 %v4305_v2 }
  0x80   : > { %v460_v0 = vld [vmem:[%s5110_s29 + $0x600] sm:$0xff]  ;;  %v4298_v4 = vcombine.high %v332_v62, %v336_v63  ;;  %3479 = vmatprep.subr.bf16.mxu1 %v4434_v61  ;;  %v4297_v10 = vcombine.low %v332_v62, %v336_v63 }
  0x81   : > { %v464_v1 = vld [vmem:[%s5110_s29 + $0x620] sm:$0xff]  ;;  %3480 = vmatpush2.bf16.msra.mxu1 %v4433_v3 }
  0x82   : > { %v4426_v5 = vcombine.high %v460_v0, %v464_v1  ;;  %v580_v6 = vld [vmem:[%s5110_s29 + $0x9c0] sm:$0xff]  ;;  %3440 = vmatprep.subr.bf16.mxu0 %v4298_v4  ;;  %v4425_v11 = vcombine.low %v460_v0, %v464_v1 }
  0x83   : > { %v584_v7 = vld [vmem:[%s5110_s29 + $0x9e0] sm:$0xff]  ;;  %3441 = vmatpush2.bf16.msra.mxu0 %v4297_v10 }
  0x84   : > { %v708_v8 = vld [vmem:[%s5110_s29 + $0xdc0] sm:$0xff]  ;;  %v4546_v12 = vcombine.high %v580_v6, %v584_v7  ;;  %3481 = vmatprep.subr.bf16.mxu1 %v4426_v5  ;;  %v4545_v21 = vcombine.low %v580_v6, %v584_v7 }
  0x85   : > { %v712_v9 = vld [vmem:[%s5110_s29 + $0xde0] sm:$0xff]  ;;  %3482 = vmatpush2.bf16.msra.mxu1 %v4425_v11 }
  0x86   : > { %v4674_v13 = vcombine.high %v708_v8, %v712_v9  ;;  %v572_v14 = vld [vmem:[%s5110_s29 + $0x980] sm:$0xff]  ;;  %3492 = vmatprep.subr.bf16.mxu0 %v4546_v12  ;;  %v4673_v22 = vcombine.low %v708_v8, %v712_v9  ;;  %3443 = vmatmul.mubr.bf16.vlgmr.msra.gmra.mxu0 %v5216_v16 }
  0x87   : > { %v576_v15 = vld [vmem:[%s5110_s29 + $0x9a0] sm:$0xff]  ;;  %3493 = vmatpush1.bf16.msra.mxu0 %v4545_v21  ;;  %3524 = vmatprep.mubr.bf16.mxu0 %v5238_v54 }
  0x88   : > { %v700_v17 = vld [vmem:[%s5110_s29 + $0xd80] sm:$0xff]  ;;  %v4538_v23 = vcombine.high %v572_v14, %v576_v15  ;;  %3533 = vmatprep.subr.bf16.mxu1 %v4674_v13  ;;  %3484 = vmatmul.mubr.bf16.vlgmr.msra.gmra.mxu1 %v5227_v20  ;;  %v4537_v30 = vcombine.low %v572_v14, %v576_v15 }
  0x89   : > { %v704_v18 = vld [vmem:[%s5110_s29 + $0xda0] sm:$0xff]  ;;  %3534 = vmatpush1.bf16.msra.mxu1 %v4673_v22  ;;  %3565 = vmatprep.mubr.bf16.mxu1 %v5245_v29 }
  0x8a   : > { %v4666_v24 = vcombine.high %v700_v17, %v704_v18  ;;  %v564_v25 = vld [vmem:[%s5110_s29 + $0x940] sm:$0xff]  ;;  %3494 = vmatprep.subr.bf16.mxu0 %v4538_v23  ;;  %v4665_v31 = vcombine.low %v700_v17, %v704_v18 }
  0x8b   : > { %v568_v26 = vld [vmem:[%s5110_s29 + $0x960] sm:$0xff]  ;;  %3495 = vmatpush1.bf16.msra.mxu0 %v4537_v30 }
  0x8c   : > { %v692_v27 = vld [vmem:[%s5110_s29 + $0xd40] sm:$0xff]  ;;  %v4530_v32 = vcombine.high %v564_v25, %v568_v26  ;;  %3535 = vmatprep.subr.bf16.mxu1 %v4666_v24  ;;  %v4529_v38 = vcombine.low %v564_v25, %v568_v26 }
  0x8d   : > { %v696_v28 = vld [vmem:[%s5110_s29 + $0xd60] sm:$0xff]  ;;  %3536 = vmatpush1.bf16.msra.mxu1 %v4665_v31 }
  0x8e   : > { %v4658_v33 = vcombine.high %v692_v27, %v696_v28  ;;  %v556_v34 = vld [vmem:[%s5110_s29 + $0x900] sm:$0xff]  ;;  %3496 = vmatprep.subr.bf16.mxu0 %v4530_v32  ;;  %v4657_v39 = vcombine.low %v692_v27, %v696_v28 }
  0x8f   : > { %v560_v35 = vld [vmem:[%s5110_s29 + $0x920] sm:$0xff]  ;;  %3497 = vmatpush1.bf16.msra.mxu0 %v4529_v38 }
  0x90   : > { %v684_v36 = vld [vmem:[%s5110_s29 + $0xd00] sm:$0xff]  ;;  %v4522_v40 = vcombine.high %v556_v34, %v560_v35  ;;  %3537 = vmatprep.subr.bf16.mxu1 %v4658_v33  ;;  %v4521_v46 = vcombine.low %v556_v34, %v560_v35 }
  0x91   : > { %v688_v37 = vld [vmem:[%s5110_s29 + $0xd20] sm:$0xff]  ;;  %3538 = vmatpush1.bf16.msra.mxu1 %v4657_v39 }
  0x92   : > { %v4650_v41 = vcombine.high %v684_v36, %v688_v37  ;;  %v548_v42 = vld [vmem:[%s5110_s29 + $0x8c0] sm:$0xff]  ;;  %3498 = vmatprep.subr.bf16.mxu0 %v4522_v40  ;;  %v4649_v47 = vcombine.low %v684_v36, %v688_v37 }
  0x93   : > { %v552_v43 = vld [vmem:[%s5110_s29 + $0x8e0] sm:$0xff]  ;;  %3499 = vmatpush1.bf16.msra.mxu0 %v4521_v46 }
  0x94   : > { %v676_v44 = vld [vmem:[%s5110_s29 + $0xcc0] sm:$0xff]  ;;  %v4514_v48 = vcombine.high %v548_v42, %v552_v43  ;;  %3539 = vmatprep.subr.bf16.mxu1 %v4650_v41  ;;  %v4513_v56 = vcombine.low %v548_v42, %v552_v43 }
  0x95   : > { %v680_v45 = vld [vmem:[%s5110_s29 + $0xce0] sm:$0xff]  ;;  %3540 = vmatpush1.bf16.msra.mxu1 %v4649_v47 }
  0x96   : > { %v4642_v49 = vcombine.high %v676_v44, %v680_v45  ;;  %v540_v50 = vld [vmem:[%s5110_s29 + $0x880] sm:$0xff]  ;;  %3500 = vmatprep.subr.bf16.mxu0 %v4514_v48  ;;  %v4641_v57 = vcombine.low %v676_v44, %v680_v45 }
  0x97   : > { %v544_v51 = vld [vmem:[%s5110_s29 + $0x8a0] sm:$0xff]  ;;  %3501 = vmatpush1.bf16.msra.mxu0 %v4513_v56 }
  0x98   : > { %v668_v52 = vld [vmem:[%s5110_s29 + $0xc80] sm:$0xff]  ;;  %v4506_v60 = vcombine.high %v540_v50, %v544_v51  ;;  %3541 = vmatprep.subr.bf16.mxu1 %v4642_v49  ;;  %v4505_v2 = vcombine.low %v540_v50, %v544_v51 }
  0x99   : > { %v672_v55 = vld [vmem:[%s5110_s29 + $0xca0] sm:$0xff]  ;;  %3542 = vmatpush1.bf16.msra.mxu1 %v4641_v57 }
  0x9a   : > { %v4634_v61 = vcombine.high %v668_v52, %v672_v55  ;;  %v532_v62 = vld [vmem:[%s5110_s29 + $0x840] sm:$0xff]  ;;  %3502 = vmatprep.subr.bf16.mxu0 %v4506_v60  ;;  %v4633_v3 = vcombine.low %v668_v52, %v672_v55 }
  0x9b   : > { %v536_v63 = vld [vmem:[%s5110_s29 + $0x860] sm:$0xff]  ;;  %3503 = vmatpush1.bf16.msra.mxu0 %v4505_v2 }
  0x9c   : > { %v660_v0 = vld [vmem:[%s5110_s29 + $0xc40] sm:$0xff]  ;;  %v4498_v4 = vcombine.high %v532_v62, %v536_v63  ;;  %3543 = vmatprep.subr.bf16.mxu1 %v4634_v61  ;;  %v4497_v10 = vcombine.low %v532_v62, %v536_v63 }
  0x9d   : > { %v664_v1 = vld [vmem:[%s5110_s29 + $0xc60] sm:$0xff]  ;;  %3544 = vmatpush1.bf16.msra.mxu1 %v4633_v3 }
  0x9e   : > { %v4626_v5 = vcombine.high %v660_v0, %v664_v1  ;;  %v524_v6 = vld [vmem:[%s5110_s29 + $0x800] sm:$0xff]  ;;  %3504 = vmatprep.subr.bf16.mxu0 %v4498_v4  ;;  %v4625_v11 = vcombine.low %v660_v0, %v664_v1 }
  0x9f   : > { %v528_v7 = vld [vmem:[%s5110_s29 + $0x820] sm:$0xff]  ;;  %3505 = vmatpush1.bf16.msra.mxu0 %v4497_v10 }
  0xa0   : > { %v652_v8 = vld [vmem:[%s5110_s29 + $0xc00] sm:$0xff]  ;;  %v4490_v12 = vcombine.high %v524_v6, %v528_v7  ;;  %3545 = vmatprep.subr.bf16.mxu1 %v4626_v5  ;;  %v4489_v21 = vcombine.low %v524_v6, %v528_v7 }
  0xa1   : > { %v656_v9 = vld [vmem:[%s5110_s29 + $0xc20] sm:$0xff]  ;;  %3546 = vmatpush1.bf16.msra.mxu1 %v4625_v11 }
  0xa2   : > { %v4618_v13 = vcombine.high %v652_v8, %v656_v9  ;;  %v644_v14 = vld [vmem:[%s5110_s29 + $0xbc0] sm:$0xff]  ;;  %3506 = vmatprep.subr.bf16.mxu0 %v4490_v12  ;;  %v4617_v22 = vcombine.low %v652_v8, %v656_v9 }
  0xa3   : > { %v648_v15 = vld [vmem:[%s5110_s29 + $0xbe0] sm:$0xff]  ;;  %3507 = vmatpush1.bf16.msra.mxu0 %v4489_v21 }
  0xa4   : > { %v772_v17 = vld [vmem:[%s5110_s29 + $0xfc0] sm:$0xff]  ;;  %v4610_v23 = vcombine.high %v644_v14, %v648_v15  ;;  %3547 = vmatprep.subr.bf16.mxu1 %v4618_v13  ;;  %v4609_v30 = vcombine.low %v644_v14, %v648_v15 }
  0xa5   : > { %v776_v18 = vld [vmem:[%s5110_s29 + $0xfe0] sm:$0xff]  ;;  %3548 = vmatpush1.bf16.msra.mxu1 %v4617_v22 }
  0xa6   : > { %v4738_v24 = vcombine.high %v772_v17, %v776_v18  ;;  %v636_v25 = vld [vmem:[%s5110_s29 + $0xb80] sm:$0xff]  ;;  %3508 = vmatprep.subr.bf16.mxu0 %v4610_v23  ;;  %v4737_v31 = vcombine.low %v772_v17, %v776_v18 }
  0xa7   : > { %v640_v26 = vld [vmem:[%s5110_s29 + $0xba0] sm:$0xff]  ;;  %3509 = vmatpush2.bf16.msra.mxu0 %v4609_v30 }
  0xa8   : > { %v764_v27 = vld [vmem:[%s5110_s29 + $0xf80] sm:$0xff]  ;;  %v4602_v32 = vcombine.high %v636_v25, %v640_v26  ;;  %3549 = vmatprep.subr.bf16.mxu1 %v4738_v24  ;;  %v4601_v38 = vcombine.low %v636_v25, %v640_v26  ;;  %v325_v25 = vld [vmem:[%s5110_s29 + $0x1c8] sm:$0xff] }
  0xa9   : > { %v768_v28 = vld [vmem:[%s5110_s29 + $0xfa0] sm:$0xff]  ;;  %3550 = vmatpush2.bf16.msra.mxu1 %v4737_v31  ;;  %v329_v26 = vld [vmem:[%s5110_s29 + $0x1e8] sm:$0xff] }
  0xaa   : > { %v4730_v33 = vcombine.high %v764_v27, %v768_v28  ;;  %v628_v34 = vld [vmem:[%s5110_s29 + $0xb40] sm:$0xff]  ;;  %3510 = vmatprep.subr.bf16.mxu0 %v4602_v32  ;;  %v4729_v39 = vcombine.low %v764_v27, %v768_v28  ;;  %v453_v27 = vld [vmem:[%s5110_s29 + $0x5c8] sm:$0xff]  ;;  %v4292_v32 = vcombine.high %v325_v25, %v329_v26 }
  0xab   : > { %v632_v35 = vld [vmem:[%s5110_s29 + $0xb60] sm:$0xff]  ;;  %3511 = vmatpush2.bf16.msra.mxu0 %v4601_v38  ;;  %v457_v28 = vld [vmem:[%s5110_s29 + $0x5e8] sm:$0xff] }
  0xac   : > { %v756_v36 = vld [vmem:[%s5110_s29 + $0xf40] sm:$0xff]  ;;  %v4594_v40 = vcombine.high %v628_v34, %v632_v35  ;;  %3551 = vmatprep.subr.bf16.mxu1 %v4730_v33  ;;  %v4593_v46 = vcombine.low %v628_v34, %v632_v35  ;;  %v4420_v33 = vcombine.high %v453_v27, %v457_v28  ;;  %v317_v34 = vld [vmem:[%s5110_s29 + $0x188] sm:$0xff] }
  0xad   : > { %v760_v37 = vld [vmem:[%s5110_s29 + $0xf60] sm:$0xff]  ;;  %3552 = vmatpush2.bf16.msra.mxu1 %v4729_v39  ;;  %v321_v35 = vld [vmem:[%s5110_s29 + $0x1a8] sm:$0xff]  ;;  %v5316_v39 = vcombine.low %v5232_v53, %v5232_v53 }
  0xae   : > { %v4722_v41 = vcombine.high %v756_v36, %v760_v37  ;;  %v620_v42 = vld [vmem:[%s5110_s29 + $0xb00] sm:$0xff]  ;;  %3512 = vmatprep.subr.bf16.mxu0 %v4594_v40  ;;  %v4721_v47 = vcombine.low %v756_v36, %v760_v37  ;;  %v5310_v36 = vcombine.low %v5223_v19, %v5223_v19  ;;  %v445_v37 = vld [vmem:[%s5110_s29 + $0x588] sm:$0xff]  ;;  %v4291_v40 = vcombine.low %v325_v25, %v329_v26 }
  0xaf   : > { %v624_v43 = vld [vmem:[%s5110_s29 + $0xb20] sm:$0xff]  ;;  %3513 = vmatpush2.bf16.msra.mxu0 %v4593_v46  ;;  %v449_v38 = vld [vmem:[%s5110_s29 + $0x5a8] sm:$0xff]  ;;  %v4283_v53 = vcombine.low %v317_v34, %v321_v35 }
  0xb0   : > { %v748_v44 = vld [vmem:[%s5110_s29 + $0xf00] sm:$0xff]  ;;  %v4586_v48 = vcombine.high %v620_v42, %v624_v43  ;;  %3553 = vmatprep.subr.bf16.mxu1 %v4722_v41  ;;  %v4585_v56 = vcombine.low %v620_v42, %v624_v43  ;;  %v4419_v41 = vcombine.low %v453_v27, %v457_v28  ;;  %v4284_v42 = vcombine.high %v317_v34, %v321_v35  ;;  %v313_v19 = vld [vmem:[%s5110_s29 + $0x168] sm:$0xff] }
  0xb1   : > { %v752_v45 = vld [vmem:[%s5110_s29 + $0xf20] sm:$0xff]  ;;  %3554 = vmatpush2.bf16.msra.mxu1 %v4721_v47  ;;  %v4412_v43 = vcombine.high %v445_v37, %v449_v38  ;;  %v441_v46 = vld [vmem:[%s5110_s29 + $0x568] sm:$0xff]  ;;  %v4411_v47 = vcombine.low %v445_v37, %v449_v38 }
  0xb2   : > { %v4714_v49 = vcombine.high %v748_v44, %v752_v45  ;;  %v612_v50 = vld [vmem:[%s5110_s29 + $0xac0] sm:$0xff]  ;;  %3514 = vmatprep.subr.bf16.mxu0 %v4586_v48  ;;  %v4713_v57 = vcombine.low %v748_v44, %v752_v45  ;;  %v309_v44 = vld [vmem:[%s5110_s29 + $0x148] sm:$0xff] }
  0xb3   : > { %v616_v51 = vld [vmem:[%s5110_s29 + $0xae0] sm:$0xff]  ;;  %3515 = vmatpush2.bf16.msra.mxu0 %v4585_v56  ;;  %v437_v45 = vld [vmem:[%s5110_s29 + $0x548] sm:$0xff]  ;;  %v4276_v48 = vcombine.high %v309_v44, %v313_v19  ;;  %v4275_v56 = vcombine.low %v309_v44, %v313_v19 }
  0xb4   : > { %v740_v52 = vld [vmem:[%s5110_s29 + $0xec0] sm:$0xff]  ;;  %v4578_v60 = vcombine.high %v612_v50, %v616_v51  ;;  %3555 = vmatprep.subr.bf16.mxu1 %v4714_v49  ;;  %v4577_v2 = vcombine.low %v612_v50, %v616_v51  ;;  %v4404_v49 = vcombine.high %v437_v45, %v441_v46  ;;  %v301_v50 = vld [vmem:[%s5110_s29 + $0x108] sm:$0xff] }
  0xb5   : > { %v744_v55 = vld [vmem:[%s5110_s29 + $0xee0] sm:$0xff]  ;;  %3556 = vmatpush2.bf16.msra.mxu1 %v4713_v57  ;;  %v305_v51 = vld [vmem:[%s5110_s29 + $0x128] sm:$0xff]  ;;  %v4403_v57 = vcombine.low %v437_v45, %v441_v46 }
  0xb6   : > { %v4706_v61 = vcombine.high %v740_v52, %v744_v55  ;;  %v604_v62 = vld [vmem:[%s5110_s29 + $0xa80] sm:$0xff]  ;;  %3516 = vmatprep.subr.bf16.mxu0 %v4578_v60  ;;  %v4705_v3 = vcombine.low %v740_v52, %v744_v55  ;;  %v429_v52 = vld [vmem:[%s5110_s29 + $0x508] sm:$0xff]  ;;  %v4268_v60 = vcombine.high %v301_v50, %v305_v51 }
  0xb7   : > { %v608_v63 = vld [vmem:[%s5110_s29 + $0xaa0] sm:$0xff]  ;;  %3517 = vmatpush2.bf16.msra.mxu0 %v4577_v2  ;;  %v433_v55 = vld [vmem:[%s5110_s29 + $0x528] sm:$0xff]  ;;  %v4267_v2 = vcombine.low %v301_v50, %v305_v51 }
  0xb8   : > { %v732_v0 = vld [vmem:[%s5110_s29 + $0xe80] sm:$0xff]  ;;  %v4570_v4 = vcombine.high %v604_v62, %v608_v63  ;;  %3557 = vmatprep.subr.bf16.mxu1 %v4706_v61  ;;  %v4569_v10 = vcombine.low %v604_v62, %v608_v63  ;;  %v4396_v61 = vcombine.high %v429_v52, %v433_v55  ;;  %v293_v62 = vld [vmem:[%s5110_s29 + $0xc8] sm:$0xff] }
  0xb9   : > { %v736_v1 = vld [vmem:[%s5110_s29 + $0xea0] sm:$0xff]  ;;  %3558 = vmatpush2.bf16.msra.mxu1 %v4705_v3  ;;  %v297_v63 = vld [vmem:[%s5110_s29 + $0xe8] sm:$0xff]  ;;  %v4395_v3 = vcombine.low %v429_v52, %v433_v55 }
  0xba   : > { %v4698_v5 = vcombine.high %v732_v0, %v736_v1  ;;  %v596_v6 = vld [vmem:[%s5110_s29 + $0xa40] sm:$0xff]  ;;  %3518 = vmatprep.subr.bf16.mxu0 %v4570_v4  ;;  %v4697_v11 = vcombine.low %v732_v0, %v736_v1  ;;  %v421_v0 = vld [vmem:[%s5110_s29 + $0x4c8] sm:$0xff]  ;;  %v4260_v4 = vcombine.high %v293_v62, %v297_v63 }
  0xbb   : > { %v600_v7 = vld [vmem:[%s5110_s29 + $0xa60] sm:$0xff]  ;;  %3519 = vmatpush2.bf16.msra.mxu0 %v4569_v10  ;;  %v425_v1 = vld [vmem:[%s5110_s29 + $0x4e8] sm:$0xff]  ;;  %v4259_v10 = vcombine.low %v293_v62, %v297_v63 }
  0xbc   : > { %v724_v8 = vld [vmem:[%s5110_s29 + $0xe40] sm:$0xff]  ;;  %v4562_v12 = vcombine.high %v596_v6, %v600_v7  ;;  %3559 = vmatprep.subr.bf16.mxu1 %v4698_v5  ;;  %v4561_v21 = vcombine.low %v596_v6, %v600_v7  ;;  %v4388_v5 = vcombine.high %v421_v0, %v425_v1  ;;  %v285_v6 = vld [vmem:[%s5110_s29 + $0x88] sm:$0xff] }
  0xbd   : > { %v728_v9 = vld [vmem:[%s5110_s29 + $0xe60] sm:$0xff]  ;;  %3560 = vmatpush2.bf16.msra.mxu1 %v4697_v11  ;;  %v289_v7 = vld [vmem:[%s5110_s29 + $0xa8] sm:$0xff]  ;;  %v4387_v11 = vcombine.low %v421_v0, %v425_v1 }
  0xbe   : > { %v4690_v13 = vcombine.high %v724_v8, %v728_v9  ;;  %v588_v14 = vld [vmem:[%s5110_s29 + $0xa00] sm:$0xff]  ;;  %3520 = vmatprep.subr.bf16.mxu0 %v4562_v12  ;;  %v4689_v22 = vcombine.low %v724_v8, %v728_v9  ;;  %v413_v8 = vld [vmem:[%s5110_s29 + $0x488] sm:$0xff]  ;;  %v4252_v12 = vcombine.high %v285_v6, %v289_v7 }
  0xbf   : > { %v592_v15 = vld [vmem:[%s5110_s29 + $0xa20] sm:$0xff]  ;;  %3521 = vmatpush2.bf16.msra.mxu0 %v4561_v21  ;;  %v417_v9 = vld [vmem:[%s5110_s29 + $0x4a8] sm:$0xff]  ;;  %v4251_v21 = vcombine.low %v285_v6, %v289_v7 }
  0xc0   : > { %v716_v17 = vld [vmem:[%s5110_s29 + $0xe00] sm:$0xff]  ;;  %v4554_v23 = vcombine.high %v588_v14, %v592_v15  ;;  %3561 = vmatprep.subr.bf16.mxu1 %v4690_v13  ;;  %v4553_v30 = vcombine.low %v588_v14, %v592_v15  ;;  %v4380_v13 = vcombine.high %v413_v8, %v417_v9  ;;  %v277_v14 = vld [vmem:[%s5110_s29 + $0x48] sm:$0xff] }
  0xc1   : > { %v720_v18 = vld [vmem:[%s5110_s29 + $0xe20] sm:$0xff]  ;;  %3562 = vmatpush2.bf16.msra.mxu1 %v4689_v22  ;;  %v281_v15 = vld [vmem:[%s5110_s29 + $0x68] sm:$0xff]  ;;  %v4379_v22 = vcombine.low %v413_v8, %v417_v9 }
  0xc2   : > { %v4682_v24 = vcombine.high %v716_v17, %v720_v18  ;;  %3522 = vmatprep.subr.bf16.mxu0 %v4554_v23  ;;  %v4681_v31 = vcombine.low %v716_v17, %v720_v18  ;;  %v405_v17 = vld [vmem:[%s5110_s29 + $0x448] sm:$0xff]  ;;  %v4244_v23 = vcombine.high %v277_v14, %v281_v15 }
  0xc3   : > { %3523 = vmatpush2.bf16.msra.mxu0 %v4553_v30  ;;  %v409_v18 = vld [vmem:[%s5110_s29 + $0x468] sm:$0xff]  ;;  %v4243_v30 = vcombine.low %v277_v14, %v281_v15 }
  0xc4   : > { %3563 = vmatprep.subr.bf16.mxu1 %v4682_v24  ;;  %3574 = vmatprep.subr.bf16.mxu0 %v4292_v32  ;;  %v4372_v24 = vcombine.high %v405_v17, %v409_v18  ;;  %v269_v25 = vld [vmem:[%s5110_s29 + $0x8] sm:$0xff] }
  0xc5   : > { %3564 = vmatpush2.bf16.msra.mxu1 %v4681_v31  ;;  %v273_v26 = vld [vmem:[%s5110_s29 + $0x28] sm:$0xff]  ;;  %v4371_v31 = vcombine.low %v405_v17, %v409_v18 }
  0xc6   : > { %3615 = vmatprep.subr.bf16.mxu1 %v4420_v33  ;;  %3525 = vmatmul.mubr.bf16.vlgmr.msra.gmra.mxu0 %v5310_v36  ;;  %v397_v27 = vld [vmem:[%s5110_s29 + $0x408] sm:$0xff]  ;;  %v4236_v32 = vcombine.high %v269_v25, %v273_v26 }
  0xc7   : > { %3575 = vmatpush1.bf16.msra.mxu0 %v4291_v40  ;;  %3606 = vmatprep.mubr.bf16.mxu0 %v5166_v58  ;;  %v401_v28 = vld [vmem:[%s5110_s29 + $0x428] sm:$0xff]  ;;  %v4235_v40 = vcombine.low %v269_v25, %v273_v26 }
  0xc8   : > { %3566 = vmatmul.mubr.bf16.vlgmr.msra.gmra.mxu1 %v5316_v39  ;;  %3576 = vmatprep.subr.bf16.mxu0 %v4284_v42  ;;  %v4364_v33 = vcombine.high %v397_v27, %v401_v28  ;;  %v389_v34 = vld [vmem:[%s5110_s29 + $0x3c8] sm:$0xff] }
  0xc9   : > { %3616 = vmatpush1.bf16.msra.mxu1 %v4419_v41  ;;  %3647 = vmatprep.mubr.bf16.mxu1 %v5170_v59  ;;  %v393_v35 = vld [vmem:[%s5110_s29 + $0x3e8] sm:$0xff]  ;;  %v4363_v41 = vcombine.low %v397_v27, %v401_v28 }
  0xca   : > { %3617 = vmatprep.subr.bf16.mxu1 %v4412_v43  ;;  %v517_v37 = vld [vmem:[%s5110_s29 + $0x7c8] sm:$0xff]  ;;  %v4356_v42 = vcombine.high %v389_v34, %v393_v35 }
  0xcb   : > { %3577 = vmatpush1.bf16.msra.mxu0 %v4283_v53  ;;  %v521_v38 = vld [vmem:[%s5110_s29 + $0x7e8] sm:$0xff]  ;;  %v4355_v53 = vcombine.low %v389_v34, %v393_v35 }
  0xcc   : > { %3578 = vmatprep.subr.bf16.mxu0 %v4276_v48  ;;  %v4484_v43 = vcombine.high %v517_v37, %v521_v38  ;;  %v381_v44 = vld [vmem:[%s5110_s29 + $0x388] sm:$0xff] }
  0xcd   : > { %3618 = vmatpush1.bf16.msra.mxu1 %v4411_v47  ;;  %v385_v19 = vld [vmem:[%s5110_s29 + $0x3a8] sm:$0xff]  ;;  %v4483_v47 = vcombine.low %v517_v37, %v521_v38 }
  0xce   : > { %3619 = vmatprep.subr.bf16.mxu1 %v4404_v49  ;;  %v509_v45 = vld [vmem:[%s5110_s29 + $0x788] sm:$0xff]  ;;  %v4348_v48 = vcombine.high %v381_v44, %v385_v19 }
  0xcf   : > { %3579 = vmatpush1.bf16.msra.mxu0 %v4275_v56  ;;  %v513_v46 = vld [vmem:[%s5110_s29 + $0x7a8] sm:$0xff]  ;;  %v4347_v56 = vcombine.low %v381_v44, %v385_v19 }
  0xd0   : > { %3580 = vmatprep.subr.bf16.mxu0 %v4268_v60  ;;  %v4476_v49 = vcombine.high %v509_v45, %v513_v46  ;;  %v373_v50 = vld [vmem:[%s5110_s29 + $0x348] sm:$0xff] }
  0xd1   : > { %3620 = vmatpush1.bf16.msra.mxu1 %v4403_v57  ;;  %v377_v51 = vld [vmem:[%s5110_s29 + $0x368] sm:$0xff]  ;;  %v4475_v57 = vcombine.low %v509_v45, %v513_v46 }
  0xd2   : > { %3621 = vmatprep.subr.bf16.mxu1 %v4396_v61  ;;  %v501_v52 = vld [vmem:[%s5110_s29 + $0x748] sm:$0xff]  ;;  %v4340_v60 = vcombine.high %v373_v50, %v377_v51 }
  0xd3   : > { %3581 = vmatpush1.bf16.msra.mxu0 %v4267_v2  ;;  %v505_v55 = vld [vmem:[%s5110_s29 + $0x768] sm:$0xff]  ;;  %v4339_v2 = vcombine.low %v373_v50, %v377_v51 }
  0xd4   : > { %3582 = vmatprep.subr.bf16.mxu0 %v4260_v4  ;;  %v4468_v61 = vcombine.high %v501_v52, %v505_v55  ;;  %v365_v62 = vld [vmem:[%s5110_s29 + $0x308] sm:$0xff] }
  0xd5   : > { %3622 = vmatpush1.bf16.msra.mxu1 %v4395_v3  ;;  %v369_v63 = vld [vmem:[%s5110_s29 + $0x328] sm:$0xff]  ;;  %v4467_v3 = vcombine.low %v501_v52, %v505_v55 }
  0xd6   : > { %3623 = vmatprep.subr.bf16.mxu1 %v4388_v5  ;;  %v493_v0 = vld [vmem:[%s5110_s29 + $0x708] sm:$0xff]  ;;  %v4332_v4 = vcombine.high %v365_v62, %v369_v63 }
  0xd7   : > { %3583 = vmatpush1.bf16.msra.mxu0 %v4259_v10  ;;  %v497_v1 = vld [vmem:[%s5110_s29 + $0x728] sm:$0xff]  ;;  %v4331_v10 = vcombine.low %v365_v62, %v369_v63 }
  0xd8   : > { %3584 = vmatprep.subr.bf16.mxu0 %v4252_v12  ;;  %v4460_v5 = vcombine.high %v493_v0, %v497_v1  ;;  %v357_v6 = vld [vmem:[%s5110_s29 + $0x2c8] sm:$0xff] }
  0xd9   : > { %3624 = vmatpush1.bf16.msra.mxu1 %v4387_v11  ;;  %v361_v7 = vld [vmem:[%s5110_s29 + $0x2e8] sm:$0xff]  ;;  %v4459_v11 = vcombine.low %v493_v0, %v497_v1 }
  0xda   : > { %3625 = vmatprep.subr.bf16.mxu1 %v4380_v13  ;;  %v485_v8 = vld [vmem:[%s5110_s29 + $0x6c8] sm:$0xff]  ;;  %v4324_v12 = vcombine.high %v357_v6, %v361_v7 }
  0xdb   : > { %3585 = vmatpush1.bf16.msra.mxu0 %v4251_v21  ;;  %v489_v9 = vld [vmem:[%s5110_s29 + $0x6e8] sm:$0xff]  ;;  %v4323_v21 = vcombine.low %v357_v6, %v361_v7 }
  0xdc   : > { %3586 = vmatprep.subr.bf16.mxu0 %v4244_v23  ;;  %v4452_v13 = vcombine.high %v485_v8, %v489_v9  ;;  %v349_v14 = vld [vmem:[%s5110_s29 + $0x288] sm:$0xff] }
  0xdd   : > { %3626 = vmatpush1.bf16.msra.mxu1 %v4379_v22  ;;  %v353_v15 = vld [vmem:[%s5110_s29 + $0x2a8] sm:$0xff]  ;;  %v4451_v22 = vcombine.low %v485_v8, %v489_v9 }
  0xde   : > { %3627 = vmatprep.subr.bf16.mxu1 %v4372_v24  ;;  %v477_v17 = vld [vmem:[%s5110_s29 + $0x688] sm:$0xff]  ;;  %v4316_v23 = vcombine.high %v349_v14, %v353_v15 }
  0xdf   : > { %3587 = vmatpush1.bf16.msra.mxu0 %v4243_v30  ;;  %v481_v18 = vld [vmem:[%s5110_s29 + $0x6a8] sm:$0xff]  ;;  %v4315_v30 = vcombine.low %v349_v14, %v353_v15 }
  0xe0   : > { %3588 = vmatprep.subr.bf16.mxu0 %v4236_v32  ;;  %v4444_v24 = vcombine.high %v477_v17, %v481_v18  ;;  %v341_v25 = vld [vmem:[%s5110_s29 + $0x248] sm:$0xff] }
  0xe1   : > { %3628 = vmatpush1.bf16.msra.mxu1 %v4371_v31  ;;  %v345_v26 = vld [vmem:[%s5110_s29 + $0x268] sm:$0xff]  ;;  %v4443_v31 = vcombine.low %v477_v17, %v481_v18 }
  0xe2   : > { %3629 = vmatprep.subr.bf16.mxu1 %v4364_v33  ;;  %v469_v27 = vld [vmem:[%s5110_s29 + $0x648] sm:$0xff]  ;;  %v4308_v32 = vcombine.high %v341_v25, %v345_v26 }
  0xe3   : > { %3589 = vmatpush1.bf16.msra.mxu0 %v4235_v40  ;;  %v473_v28 = vld [vmem:[%s5110_s29 + $0x668] sm:$0xff]  ;;  %v4307_v40 = vcombine.low %v341_v25, %v345_v26 }
  0xe4   : > { %3590 = vmatprep.subr.bf16.mxu0 %v4356_v42  ;;  %v4436_v33 = vcombine.high %v469_v27, %v473_v28  ;;  %v333_v34 = vld [vmem:[%s5110_s29 + $0x208] sm:$0xff] }
  0xe5   : > { %3630 = vmatpush1.bf16.msra.mxu1 %v4363_v41  ;;  %v337_v35 = vld [vmem:[%s5110_s29 + $0x228] sm:$0xff]  ;;  %v4435_v41 = vcombine.low %v469_v27, %v473_v28 }
  0xe6   : > { %3631 = vmatprep.subr.bf16.mxu1 %v4484_v43  ;;  %v461_v37 = vld [vmem:[%s5110_s29 + $0x608] sm:$0xff]  ;;  %v4300_v42 = vcombine.high %v333_v34, %v337_v35 }
  0xe7   : > { %3591 = vmatpush2.bf16.msra.mxu0 %v4355_v53  ;;  %v465_v38 = vld [vmem:[%s5110_s29 + $0x628] sm:$0xff]  ;;  %v4299_v53 = vcombine.low %v333_v34, %v337_v35 }
  0xe8   : > { %3592 = vmatprep.subr.bf16.mxu0 %v4348_v48  ;;  %v4428_v43 = vcombine.high %v461_v37, %v465_v38  ;;  %v581_v44 = vld [vmem:[%s5110_s29 + $0x9c8] sm:$0xff] }
  0xe9   : > { %3632 = vmatpush2.bf16.msra.mxu1 %v4483_v47  ;;  %v585_v19 = vld [vmem:[%s5110_s29 + $0x9e8] sm:$0xff]  ;;  %v4427_v47 = vcombine.low %v461_v37, %v465_v38 }
  0xea   : > { %3633 = vmatprep.subr.bf16.mxu1 %v4476_v49  ;;  %v709_v45 = vld [vmem:[%s5110_s29 + $0xdc8] sm:$0xff]  ;;  %v4548_v48 = vcombine.high %v581_v44, %v585_v19 }
  0xeb   : > { %3593 = vmatpush2.bf16.msra.mxu0 %v4347_v56  ;;  %v713_v46 = vld [vmem:[%s5110_s29 + $0xde8] sm:$0xff]  ;;  %v4547_v56 = vcombine.low %v581_v44, %v585_v19 }
  0xec   : > { %3594 = vmatprep.subr.bf16.mxu0 %v4340_v60  ;;  %v4676_v49 = vcombine.high %v709_v45, %v713_v46  ;;  %v573_v50 = vld [vmem:[%s5110_s29 + $0x988] sm:$0xff] }
  0xed   : > { %3634 = vmatpush2.bf16.msra.mxu1 %v4475_v57  ;;  %v577_v51 = vld [vmem:[%s5110_s29 + $0x9a8] sm:$0xff]  ;;  %v4675_v57 = vcombine.low %v709_v45, %v713_v46 }
  0xee   : > { %3635 = vmatprep.subr.bf16.mxu1 %v4468_v61  ;;  %v701_v52 = vld [vmem:[%s5110_s29 + $0xd88] sm:$0xff]  ;;  %v4540_v60 = vcombine.high %v573_v50, %v577_v51 }
  0xef   : > { %3595 = vmatpush2.bf16.msra.mxu0 %v4339_v2  ;;  %v705_v55 = vld [vmem:[%s5110_s29 + $0xda8] sm:$0xff]  ;;  %v4539_v2 = vcombine.low %v573_v50, %v577_v51 }
  0xf0   : > { %3596 = vmatprep.subr.bf16.mxu0 %v4332_v4  ;;  %v4668_v61 = vcombine.high %v701_v52, %v705_v55  ;;  %v565_v62 = vld [vmem:[%s5110_s29 + $0x948] sm:$0xff] }
  0xf1   : > { %3636 = vmatpush2.bf16.msra.mxu1 %v4467_v3  ;;  %v569_v63 = vld [vmem:[%s5110_s29 + $0x968] sm:$0xff]  ;;  %v4667_v3 = vcombine.low %v701_v52, %v705_v55 }
  0xf2   : > { %3637 = vmatprep.subr.bf16.mxu1 %v4460_v5  ;;  %v693_v0 = vld [vmem:[%s5110_s29 + $0xd48] sm:$0xff]  ;;  %v4532_v4 = vcombine.high %v565_v62, %v569_v63 }
  0xf3   : > { %3597 = vmatpush2.bf16.msra.mxu0 %v4331_v10  ;;  %v697_v1 = vld [vmem:[%s5110_s29 + $0xd68] sm:$0xff]  ;;  %v4531_v10 = vcombine.low %v565_v62, %v569_v63 }
  0xf4   : > { %3598 = vmatprep.subr.bf16.mxu0 %v4324_v12  ;;  %v4660_v5 = vcombine.high %v693_v0, %v697_v1  ;;  %v557_v6 = vld [vmem:[%s5110_s29 + $0x908] sm:$0xff] }
  0xf5   : > { %3638 = vmatpush2.bf16.msra.mxu1 %v4459_v11  ;;  %v561_v7 = vld [vmem:[%s5110_s29 + $0x928] sm:$0xff]  ;;  %v4659_v11 = vcombine.low %v693_v0, %v697_v1 }
  0xf6   : > { %3639 = vmatprep.subr.bf16.mxu1 %v4452_v13  ;;  %v685_v8 = vld [vmem:[%s5110_s29 + $0xd08] sm:$0xff]  ;;  %v4524_v12 = vcombine.high %v557_v6, %v561_v7 }
  0xf7   : > { %3599 = vmatpush2.bf16.msra.mxu0 %v4323_v21  ;;  %v689_v9 = vld [vmem:[%s5110_s29 + $0xd28] sm:$0xff]  ;;  %v4523_v21 = vcombine.low %v557_v6, %v561_v7 }
  0xf8   : > { %3600 = vmatprep.subr.bf16.mxu0 %v4316_v23  ;;  %v4652_v13 = vcombine.high %v685_v8, %v689_v9  ;;  %v549_v14 = vld [vmem:[%s5110_s29 + $0x8c8] sm:$0xff] }
  0xf9   : > { %3640 = vmatpush2.bf16.msra.mxu1 %v4451_v22  ;;  %v553_v15 = vld [vmem:[%s5110_s29 + $0x8e8] sm:$0xff]  ;;  %v4651_v22 = vcombine.low %v685_v8, %v689_v9 }
  0xfa   : > { %3641 = vmatprep.subr.bf16.mxu1 %v4444_v24  ;;  %v677_v17 = vld [vmem:[%s5110_s29 + $0xcc8] sm:$0xff]  ;;  %v4516_v23 = vcombine.high %v549_v14, %v553_v15 }
  0xfb   : > { %3601 = vmatpush2.bf16.msra.mxu0 %v4315_v30  ;;  %v681_v18 = vld [vmem:[%s5110_s29 + $0xce8] sm:$0xff]  ;;  %v4515_v30 = vcombine.low %v549_v14, %v553_v15 }
  0xfc   : > { %3602 = vmatprep.subr.bf16.mxu0 %v4308_v32  ;;  %v4644_v24 = vcombine.high %v677_v17, %v681_v18  ;;  %v541_v25 = vld [vmem:[%s5110_s29 + $0x888] sm:$0xff] }
  0xfd   : > { %3642 = vmatpush2.bf16.msra.mxu1 %v4443_v31  ;;  %v545_v26 = vld [vmem:[%s5110_s29 + $0x8a8] sm:$0xff]  ;;  %v4643_v31 = vcombine.low %v677_v17, %v681_v18 }
  0xfe   : > { %3643 = vmatprep.subr.bf16.mxu1 %v4436_v33  ;;  %v669_v27 = vld [vmem:[%s5110_s29 + $0xc88] sm:$0xff]  ;;  %v4508_v32 = vcombine.high %v541_v25, %v545_v26 }
  0xff   : > { %3603 = vmatpush2.bf16.msra.mxu0 %v4307_v40  ;;  %v673_v28 = vld [vmem:[%s5110_s29 + $0xca8] sm:$0xff]  ;;  %v4507_v40 = vcombine.low %v541_v25, %v545_v26 }
 0x100   : > { %3604 = vmatprep.subr.bf16.mxu0 %v4300_v42  ;;  %v4636_v33 = vcombine.high %v669_v27, %v673_v28  ;;  %v533_v34 = vld [vmem:[%s5110_s29 + $0x848] sm:$0xff] }
 0x101   : > { %3644 = vmatpush2.bf16.msra.mxu1 %v4435_v41  ;;  %v537_v35 = vld [vmem:[%s5110_s29 + $0x868] sm:$0xff]  ;;  %v4635_v41 = vcombine.low %v669_v27, %v673_v28 }
 0x102   : > { %3645 = vmatprep.subr.bf16.mxu1 %v4428_v43  ;;  %v661_v37 = vld [vmem:[%s5110_s29 + $0xc48] sm:$0xff]  ;;  %v4500_v42 = vcombine.high %v533_v34, %v537_v35 }
 0x103   : > { %3605 = vmatpush2.bf16.msra.mxu0 %v4299_v53  ;;  %v665_v38 = vld [vmem:[%s5110_s29 + $0xc68] sm:$0xff]  ;;  %v4499_v53 = vcombine.low %v533_v34, %v537_v35 }
 0x104   : > { %3656 = vmatprep.subr.bf16.mxu0 %v4548_v48  ;;  %v4628_v43 = vcombine.high %v661_v37, %v665_v38  ;;  %v525_v44 = vld [vmem:[%s5110_s29 + $0x808] sm:$0xff] }
 0x105   : > { %3646 = vmatpush2.bf16.msra.mxu1 %v4427_v47  ;;  %v529_v19 = vld [vmem:[%s5110_s29 + $0x828] sm:$0xff]  ;;  %v4627_v47 = vcombine.low %v661_v37, %v665_v38 }
 0x106   : > { %3697 = vmatprep.subr.bf16.mxu1 %v4676_v49  ;;  %3607 = vmatmul.mubr.bf16.vlgmr.msra.gmra.mxu0 %v5216_v16  ;;  %v653_v45 = vld [vmem:[%s5110_s29 + $0xc08] sm:$0xff]  ;;  %v4492_v48 = vcombine.high %v525_v44, %v529_v19 }
 0x107   : > { %3657 = vmatpush1.bf16.msra.mxu0 %v4547_v56  ;;  %3688 = vmatprep.mubr.bf16.mxu0 %v5238_v54  ;;  %v657_v46 = vld [vmem:[%s5110_s29 + $0xc28] sm:$0xff]  ;;  %v4491_v56 = vcombine.low %v525_v44, %v529_v19 }
 0x108   : > { %3648 = vmatmul.mubr.bf16.vlgmr.msra.gmra.mxu1 %v5227_v20  ;;  %3658 = vmatprep.subr.bf16.mxu0 %v4540_v60  ;;  %v4620_v49 = vcombine.high %v653_v45, %v657_v46  ;;  %v645_v50 = vld [vmem:[%s5110_s29 + $0xbc8] sm:$0xff] }
 0x109   : > { %3698 = vmatpush1.bf16.msra.mxu1 %v4675_v57  ;;  %3729 = vmatprep.mubr.bf16.mxu1 %v5245_v29  ;;  %v649_v51 = vld [vmem:[%s5110_s29 + $0xbe8] sm:$0xff]  ;;  %v4619_v57 = vcombine.low %v653_v45, %v657_v46 }
 0x10a   : > { %3699 = vmatprep.subr.bf16.mxu1 %v4668_v61  ;;  %v773_v52 = vld [vmem:[%s5110_s29 + $0xfc8] sm:$0xff]  ;;  %v4612_v60 = vcombine.high %v645_v50, %v649_v51 }
 0x10b   : > { %3659 = vmatpush1.bf16.msra.mxu0 %v4539_v2  ;;  %v777_v55 = vld [vmem:[%s5110_s29 + $0xfe8] sm:$0xff]  ;;  %v4611_v2 = vcombine.low %v645_v50, %v649_v51 }
 0x10c   : > { %3660 = vmatprep.subr.bf16.mxu0 %v4532_v4  ;;  %v4740_v61 = vcombine.high %v773_v52, %v777_v55  ;;  %v637_v62 = vld [vmem:[%s5110_s29 + $0xb88] sm:$0xff] }
 0x10d   : > { %3700 = vmatpush1.bf16.msra.mxu1 %v4667_v3  ;;  %v641_v63 = vld [vmem:[%s5110_s29 + $0xba8] sm:$0xff]  ;;  %v4739_v3 = vcombine.low %v773_v52, %v777_v55 }
 0x10e   : > { %3701 = vmatprep.subr.bf16.mxu1 %v4660_v5  ;;  %v765_v0 = vld [vmem:[%s5110_s29 + $0xf88] sm:$0xff]  ;;  %v4604_v4 = vcombine.high %v637_v62, %v641_v63 }
 0x10f   : > { %3661 = vmatpush1.bf16.msra.mxu0 %v4531_v10  ;;  %v769_v1 = vld [vmem:[%s5110_s29 + $0xfa8] sm:$0xff]  ;;  %v4603_v10 = vcombine.low %v637_v62, %v641_v63  ;;  %v326_v62 = vld [vmem:[%s5110_s29 + $0x1d0] sm:$0xff] }
 0x110   : > { %3662 = vmatprep.subr.bf16.mxu0 %v4524_v12  ;;  %v4732_v5 = vcombine.high %v765_v0, %v769_v1  ;;  %v629_v6 = vld [vmem:[%s5110_s29 + $0xb48] sm:$0xff]  ;;  %v330_v63 = vld [vmem:[%s5110_s29 + $0x1f0] sm:$0xff] }
 0x111   : > { %3702 = vmatpush1.bf16.msra.mxu1 %v4659_v11  ;;  %v633_v7 = vld [vmem:[%s5110_s29 + $0xb68] sm:$0xff]  ;;  %v4731_v11 = vcombine.low %v765_v0, %v769_v1  ;;  %v454_v0 = vld [vmem:[%s5110_s29 + $0x5d0] sm:$0xff] }
 0x112   : > { %3703 = vmatprep.subr.bf16.mxu1 %v4652_v13  ;;  %v757_v8 = vld [vmem:[%s5110_s29 + $0xf48] sm:$0xff]  ;;  %v4596_v12 = vcombine.high %v629_v6, %v633_v7  ;;  %v458_v1 = vld [vmem:[%s5110_s29 + $0x5f0] sm:$0xff] }
 0x113   : > { %3663 = vmatpush1.bf16.msra.mxu0 %v4523_v21  ;;  %v761_v9 = vld [vmem:[%s5110_s29 + $0xf68] sm:$0xff]  ;;  %v4595_v21 = vcombine.low %v629_v6, %v633_v7  ;;  %v318_v6 = vld [vmem:[%s5110_s29 + $0x190] sm:$0xff] }
 0x114   : > { %3664 = vmatprep.subr.bf16.mxu0 %v4516_v23  ;;  %v4724_v13 = vcombine.high %v757_v8, %v761_v9  ;;  %v621_v14 = vld [vmem:[%s5110_s29 + $0xb08] sm:$0xff]  ;;  %v322_v7 = vld [vmem:[%s5110_s29 + $0x1b0] sm:$0xff] }
 0x115   : > { %3704 = vmatpush1.bf16.msra.mxu1 %v4651_v22  ;;  %v625_v15 = vld [vmem:[%s5110_s29 + $0xb28] sm:$0xff]  ;;  %v4723_v22 = vcombine.low %v757_v8, %v761_v9  ;;  %v446_v8 = vld [vmem:[%s5110_s29 + $0x590] sm:$0xff] }
 0x116   : > { %3705 = vmatprep.subr.bf16.mxu1 %v4644_v24  ;;  %v749_v17 = vld [vmem:[%s5110_s29 + $0xf08] sm:$0xff]  ;;  %v4588_v23 = vcombine.high %v621_v14, %v625_v15  ;;  %v450_v9 = vld [vmem:[%s5110_s29 + $0x5b0] sm:$0xff] }
 0x117   : > { %3665 = vmatpush1.bf16.msra.mxu0 %v4515_v30  ;;  %v753_v18 = vld [vmem:[%s5110_s29 + $0xf28] sm:$0xff]  ;;  %v4587_v30 = vcombine.low %v621_v14, %v625_v15  ;;  %v310_v14 = vld [vmem:[%s5110_s29 + $0x150] sm:$0xff] }
 0x118   : > { %3666 = vmatprep.subr.bf16.mxu0 %v4508_v32  ;;  %v4716_v24 = vcombine.high %v749_v17, %v753_v18  ;;  %v613_v25 = vld [vmem:[%s5110_s29 + $0xac8] sm:$0xff]  ;;  %v314_v15 = vld [vmem:[%s5110_s29 + $0x170] sm:$0xff] }
 0x119   : > { %3706 = vmatpush1.bf16.msra.mxu1 %v4643_v31  ;;  %v617_v26 = vld [vmem:[%s5110_s29 + $0xae8] sm:$0xff]  ;;  %v4715_v31 = vcombine.low %v749_v17, %v753_v18  ;;  %v438_v18 = vld [vmem:[%s5110_s29 + $0x550] sm:$0xff] }
 0x11a   : > { %3707 = vmatprep.subr.bf16.mxu1 %v4636_v33  ;;  %v741_v27 = vld [vmem:[%s5110_s29 + $0xec8] sm:$0xff]  ;;  %v4580_v32 = vcombine.high %v613_v25, %v617_v26 }
 0x11b   : > { %3667 = vmatpush1.bf16.msra.mxu0 %v4507_v40  ;;  %v745_v28 = vld [vmem:[%s5110_s29 + $0xee8] sm:$0xff]  ;;  %v4579_v40 = vcombine.low %v613_v25, %v617_v26  ;;  %v4413_v25 = vcombine.low %v446_v8, %v450_v9  ;;  %v4278_v26 = vcombine.high %v310_v14, %v314_v15 }
 0x11c   : > { %3668 = vmatprep.subr.bf16.mxu0 %v4500_v42  ;;  %v4708_v33 = vcombine.high %v741_v27, %v745_v28  ;;  %v605_v34 = vld [vmem:[%s5110_s29 + $0xa88] sm:$0xff] }
 0x11d   : > { %3708 = vmatpush1.bf16.msra.mxu1 %v4635_v41  ;;  %v609_v35 = vld [vmem:[%s5110_s29 + $0xaa8] sm:$0xff]  ;;  %v4707_v41 = vcombine.low %v741_v27, %v745_v28 }
 0x11e   : > { %3709 = vmatprep.subr.bf16.mxu1 %v4628_v43  ;;  %v733_v37 = vld [vmem:[%s5110_s29 + $0xe88] sm:$0xff]  ;;  %v4572_v42 = vcombine.high %v605_v34, %v609_v35 }
 0x11f   : > { %3669 = vmatpush1.bf16.msra.mxu0 %v4499_v53  ;;  %v737_v38 = vld [vmem:[%s5110_s29 + $0xea8] sm:$0xff]  ;;  %v4571_v53 = vcombine.low %v605_v34, %v609_v35  ;;  %v434_v34 = vld [vmem:[%s5110_s29 + $0x530] sm:$0xff] }
 0x120   : > { %3670 = vmatprep.subr.bf16.mxu0 %v4492_v48  ;;  %v4700_v43 = vcombine.high %v733_v37, %v737_v38  ;;  %v597_v44 = vld [vmem:[%s5110_s29 + $0xa48] sm:$0xff] }
 0x121   : > { %3710 = vmatpush1.bf16.msra.mxu1 %v4627_v47  ;;  %v601_v19 = vld [vmem:[%s5110_s29 + $0xa68] sm:$0xff]  ;;  %v4699_v47 = vcombine.low %v733_v37, %v737_v38  ;;  %v4277_v37 = vcombine.low %v310_v14, %v314_v15  ;;  %v390_v14 = vld [vmem:[%s5110_s29 + $0x3d0] sm:$0xff] }
 0x122   : > { %3711 = vmatprep.subr.bf16.mxu1 %v4620_v49  ;;  %v725_v45 = vld [vmem:[%s5110_s29 + $0xe48] sm:$0xff]  ;;  %v4564_v48 = vcombine.high %v597_v44, %v601_v19  ;;  %v394_v15 = vld [vmem:[%s5110_s29 + $0x3f0] sm:$0xff] }
 0x123   : > { %3671 = vmatpush1.bf16.msra.mxu0 %v4491_v56  ;;  %v729_v46 = vld [vmem:[%s5110_s29 + $0xe68] sm:$0xff]  ;;  %v4563_v56 = vcombine.low %v597_v44, %v601_v19  ;;  %v294_v44 = vld [vmem:[%s5110_s29 + $0xd0] sm:$0xff] }
 0x124   : > { %3672 = vmatprep.subr.bf16.mxu0 %v4612_v60  ;;  %v4692_v49 = vcombine.high %v725_v45, %v729_v46  ;;  %v589_v50 = vld [vmem:[%s5110_s29 + $0xa08] sm:$0xff]  ;;  %v298_v19 = vld [vmem:[%s5110_s29 + $0xf0] sm:$0xff] }
 0x125   : > { %3712 = vmatpush1.bf16.msra.mxu1 %v4619_v57  ;;  %v593_v51 = vld [vmem:[%s5110_s29 + $0xa28] sm:$0xff]  ;;  %v4691_v57 = vcombine.low %v725_v45, %v729_v46  ;;  %v422_v45 = vld [vmem:[%s5110_s29 + $0x4d0] sm:$0xff] }
 0x126   : > { %3713 = vmatprep.subr.bf16.mxu1 %v4740_v61  ;;  %v717_v52 = vld [vmem:[%s5110_s29 + $0xe08] sm:$0xff]  ;;  %v4556_v60 = vcombine.high %v589_v50, %v593_v51  ;;  %v426_v46 = vld [vmem:[%s5110_s29 + $0x4f0] sm:$0xff] }
 0x127   : > { %3673 = vmatpush2.bf16.msra.mxu0 %v4611_v2  ;;  %v721_v55 = vld [vmem:[%s5110_s29 + $0xe28] sm:$0xff]  ;;  %v4555_v2 = vcombine.low %v589_v50, %v593_v51  ;;  %v286_v50 = vld [vmem:[%s5110_s29 + $0x90] sm:$0xff] }
 0x128   : > { %3674 = vmatprep.subr.bf16.mxu0 %v4604_v4  ;;  %v4684_v61 = vcombine.high %v717_v52, %v721_v55  ;;  %v4294_v4 = vcombine.high %v326_v62, %v330_v63  ;;  %v290_v51 = vld [vmem:[%s5110_s29 + $0xb0] sm:$0xff] }
 0x129   : > { %3714 = vmatpush2.bf16.msra.mxu1 %v4739_v3  ;;  %v4683_v3 = vcombine.low %v717_v52, %v721_v55  ;;  %v414_v52 = vld [vmem:[%s5110_s29 + $0x490] sm:$0xff] }
 0x12a   : > { %3715 = vmatprep.subr.bf16.mxu1 %v4732_v5  ;;  %v4422_v5 = vcombine.high %v454_v0, %v458_v1  ;;  %v418_v55 = vld [vmem:[%s5110_s29 + $0x4b0] sm:$0xff] }
 0x12b   : > { %3675 = vmatpush2.bf16.msra.mxu0 %v4603_v10  ;;  %v4293_v10 = vcombine.low %v326_v62, %v330_v63  ;;  %v278_v62 = vld [vmem:[%s5110_s29 + $0x50] sm:$0xff] }
 0x12c   : > { %3676 = vmatprep.subr.bf16.mxu0 %v4596_v12  ;;  %v4286_v12 = vcombine.high %v318_v6, %v322_v7  ;;  %v282_v63 = vld [vmem:[%s5110_s29 + $0x70] sm:$0xff] }
 0x12d   : > { %3716 = vmatpush2.bf16.msra.mxu1 %v4731_v11  ;;  %v4421_v11 = vcombine.low %v454_v0, %v458_v1  ;;  %v406_v0 = vld [vmem:[%s5110_s29 + $0x450] sm:$0xff] }
 0x12e   : > { %3717 = vmatprep.subr.bf16.mxu1 %v4724_v13  ;;  %v4414_v13 = vcombine.high %v446_v8, %v450_v9  ;;  %v410_v1 = vld [vmem:[%s5110_s29 + $0x470] sm:$0xff] }
 0x12f   : > { %3677 = vmatpush2.bf16.msra.mxu0 %v4595_v21  ;;  %v442_v21 = vld [vmem:[%s5110_s29 + $0x570] sm:$0xff] }
 0x130   : > { %3678 = vmatprep.subr.bf16.mxu0 %v4588_v23  ;;  %v4285_v23 = vcombine.low %v318_v6, %v322_v7  ;;  %v4406_v28 = vcombine.high %v438_v18, %v442_v21  ;;  %v270_v6 = vld [vmem:[%s5110_s29 + $0x10] sm:$0xff] }
 0x131   : > { %3718 = vmatpush2.bf16.msra.mxu1 %v4723_v22  ;;  %v274_v7 = vld [vmem:[%s5110_s29 + $0x30] sm:$0xff] }
 0x132   : > { %3719 = vmatprep.subr.bf16.mxu1 %v4716_v24  ;;  %v398_v8 = vld [vmem:[%s5110_s29 + $0x410] sm:$0xff] }
 0x133   : > { %3679 = vmatpush2.bf16.msra.mxu0 %v4587_v30  ;;  %v302_v30 = vld [vmem:[%s5110_s29 + $0x110] sm:$0xff] }
 0x134   : > { %3680 = vmatprep.subr.bf16.mxu0 %v4580_v32  ;;  %v402_v9 = vld [vmem:[%s5110_s29 + $0x430] sm:$0xff] }
 0x135   : > { %3720 = vmatpush2.bf16.msra.mxu1 %v4715_v31  ;;  %v306_v31 = vld [vmem:[%s5110_s29 + $0x130] sm:$0xff] }
 0x136   : > { %3721 = vmatprep.subr.bf16.mxu1 %v4708_v33  ;;  %v430_v33 = vld [vmem:[%s5110_s29 + $0x510] sm:$0xff] }
 0x137   : > { %3681 = vmatpush2.bf16.msra.mxu0 %v4579_v40  ;;  %v4405_v40 = vcombine.low %v438_v18, %v442_v21  ;;  %v518_v18 = vld [vmem:[%s5110_s29 + $0x7d0] sm:$0xff] }
 0x138   : > { %3682 = vmatprep.subr.bf16.mxu0 %v4572_v42  ;;  %v522_v21 = vld [vmem:[%s5110_s29 + $0x7f0] sm:$0xff] }
 0x139   : > { %3722 = vmatpush2.bf16.msra.mxu1 %v4707_v41  ;;  %v4270_v41 = vcombine.high %v302_v30, %v306_v31 }
 0x13a   : > { %3723 = vmatprep.subr.bf16.mxu1 %v4700_v43  ;;  %v4398_v43 = vcombine.high %v430_v33, %v434_v34 }
 0x13b   : > { %3683 = vmatpush2.bf16.msra.mxu0 %v4571_v53  ;;  %v4269_v53 = vcombine.low %v302_v30, %v306_v31  ;;  %v382_v30 = vld [vmem:[%s5110_s29 + $0x390] sm:$0xff] }
 0x13c   : > { %3684 = vmatprep.subr.bf16.mxu0 %v4564_v48  ;;  %v4262_v48 = vcombine.high %v294_v44, %v298_v19  ;;  %v386_v31 = vld [vmem:[%s5110_s29 + $0x3b0] sm:$0xff] }
 0x13d   : > { %3724 = vmatpush2.bf16.msra.mxu1 %v4699_v47  ;;  %v4397_v47 = vcombine.low %v430_v33, %v434_v34  ;;  %v514_v33 = vld [vmem:[%s5110_s29 + $0x7b0] sm:$0xff]  ;;  %v4357_v34 = vcombine.low %v390_v14, %v394_v15 }
 0x13e   : > { %3725 = vmatprep.subr.bf16.mxu1 %v4692_v49  ;;  %v4390_v49 = vcombine.high %v422_v45, %v426_v46 }
 0x13f   : > { %3685 = vmatpush2.bf16.msra.mxu0 %v4563_v56  ;;  %v4261_v56 = vcombine.low %v294_v44, %v298_v19  ;;  %v4349_v44 = vcombine.low %v382_v30, %v386_v31 }
 0x140   : > { %3686 = vmatprep.subr.bf16.mxu0 %v4556_v60  ;;  %v4254_v60 = vcombine.high %v286_v50, %v290_v51 }
 0x141   : > { %3726 = vmatpush2.bf16.msra.mxu1 %v4691_v57  ;;  %v4389_v57 = vcombine.low %v422_v45, %v426_v46 }
 0x142   : > { %3727 = vmatprep.subr.bf16.mxu1 %v4684_v61  ;;  %v4382_v61 = vcombine.high %v414_v52, %v418_v55 }
 0x143   : > { %3687 = vmatpush2.bf16.msra.mxu0 %v4555_v2  ;;  %v4253_v2 = vcombine.low %v286_v50, %v290_v51 }
 0x144   : > { %3738 = vmatprep.subr.bf16.mxu0 %v4294_v4  ;;  %v4246_v4 = vcombine.high %v278_v62, %v282_v63 }
 0x145   : > { %3728 = vmatpush2.bf16.msra.mxu1 %v4683_v3  ;;  %v4381_v3 = vcombine.low %v414_v52, %v418_v55 }
 0x146   : > { %3779 = vmatprep.subr.bf16.mxu1 %v4422_v5  ;;  %v5456_v17 = vpop.f32.mrf.mxu0  ;;  %3689 = vmatmul.mubr.bf16.vlgmr.msra.gmra.mxu0 %v5310_v36  ;;  %v4374_v5 = vcombine.high %v406_v0, %v410_v1 }
 0x147   : > { %3739 = vmatpush1.bf16.msra.mxu0 %v4293_v10  ;;  %3770 = vmatprep.mubr.bf16.mxu0 %v5166_v58  ;;  %v4245_v10 = vcombine.low %v278_v62, %v282_v63 }
 0x148   : > { %v5461_v22 = vpop.f32.mrf.mxu1  ;;  %3730 = vmatmul.mubr.bf16.vlgmr.msra.gmra.mxu1 %v5316_v39  ;;  %v5464_v24 = vpop.f32.mrf.mxu0  ;;  %3740 = vmatprep.subr.bf16.mxu0 %v4286_v12  ;;  %v4238_v12 = vcombine.high %v270_v6, %v274_v7 }
 0x149   : > { %3780 = vmatpush1.bf16.msra.mxu1 %v4421_v11  ;;  %3811 = vmatprep.mubr.bf16.mxu1 %v5170_v59  ;;  %v4373_v11 = vcombine.low %v406_v0, %v410_v1  ;;  %v782_v1 = vlaneseq }
 0x14a   : > { %v5466_v27 = vpop.f32.mrf.mxu1  ;;  %3781 = vmatprep.subr.bf16.mxu1 %v4414_v13  ;;  %v3448_v32 = vpop.f32.mrf.mxu0  ;;  %v4366_v13 = vcombine.high %v398_v8, %v402_v9 }
 0x14b   : > { %3741 = vmatpush1.bf16.msra.mxu0 %v4285_v23  ;;  %v4237_v23 = vcombine.low %v270_v6, %v274_v7  ;;  %v510_v32 = vld [vmem:[%s5110_s29 + $0x790] sm:$0xff] }
 0x14c   : > { %v3489_v35 = vpop.f32.mrf.mxu1  ;;  %v3449_v38 = vpop.f32.mrf.mxu0  ;;  %3742 = vmatprep.subr.bf16.mxu0 %v4278_v26  ;;  %v4358_v26 = vcombine.high %v390_v14, %v394_v15  ;;  %v4477_v19 = vcombine.low %v510_v32, %v514_v33  ;;  %v482_v6 = vld [vmem:[%s5110_s29 + $0x6b0] sm:$0xff] }
 0x14d   : > { %3782 = vmatpush1.bf16.msra.mxu1 %v4413_v25  ;;  %v4365_v25 = vcombine.low %v398_v8, %v402_v9  ;;  %v4485_v35 = vcombine.low %v518_v18, %v522_v21  ;;  %v4478_v38 = vcombine.high %v510_v32, %v514_v33  ;;  %v470_v14 = vld [vmem:[%s5110_s29 + $0x650] sm:$0xff] }
 0x14e   : > { %v3490_v42 = vpop.f32.mrf.mxu1  ;;  %3783 = vmatprep.subr.bf16.mxu1 %v4406_v28  ;;  %v4486_v28 = vcombine.high %v518_v18, %v522_v21  ;;  %v474_v15 = vld [vmem:[%s5110_s29 + $0x670] sm:$0xff] }
 0x14f   : > { %3743 = vmatpush1.bf16.msra.mxu0 %v4277_v37  ;;  %v4350_v37 = vcombine.high %v382_v30, %v386_v31  ;;  %v502_v42 = vld [vmem:[%s5110_s29 + $0x750] sm:$0xff]  ;;  %v5524_v31 = vld [vmem:[%s5118_s9] sm:$0xff] }
 0x150   : > { %3744 = vmatprep.subr.bf16.mxu0 %v4270_v41  ;;  %v378_v41 = vld [vmem:[%s5110_s29 + $0x370] sm:$0xff] }
 0x151   : > { %3784 = vmatpush1.bf16.msra.mxu1 %v4405_v40  ;;  %v374_v40 = vld [vmem:[%s5110_s29 + $0x350] sm:$0xff] }
 0x152   : > { %3785 = vmatprep.subr.bf16.mxu1 %v4398_v43  ;;  %v506_v43 = vld [vmem:[%s5110_s29 + $0x770] sm:$0xff]  ;;  %v4342_v45 = vcombine.high %v374_v40, %v378_v41  ;;  %v4341_v50 = vcombine.low %v374_v40, %v378_v41 }
 0x153   : > { %3745 = vmatpush1.bf16.msra.mxu0 %v4269_v53  ;;  %v4470_v46 = vcombine.high %v502_v42, %v506_v43  ;;  %v366_v53 = vld [vmem:[%s5110_s29 + $0x310] sm:$0xff]  ;;  %v4469_v51 = vcombine.low %v502_v42, %v506_v43 }
 0x154   : > { %3746 = vmatprep.subr.bf16.mxu0 %v4262_v48  ;;  %v494_v48 = vld [vmem:[%s5110_s29 + $0x710] sm:$0xff] }
 0x155   : > { %3786 = vmatpush1.bf16.msra.mxu1 %v4397_v47  ;;  %v370_v47 = vld [vmem:[%s5110_s29 + $0x330] sm:$0xff] }
 0x156   : > { %3787 = vmatprep.subr.bf16.mxu1 %v4390_v49  ;;  %v498_v49 = vld [vmem:[%s5110_s29 + $0x730] sm:$0xff]  ;;  %v4334_v52 = vcombine.high %v366_v53, %v370_v47  ;;  %v4333_v62 = vcombine.low %v366_v53, %v370_v47 }
 0x157   : > { %3747 = vmatpush1.bf16.msra.mxu0 %v4261_v56  ;;  %v4462_v55 = vcombine.high %v494_v48, %v498_v49  ;;  %v358_v56 = vld [vmem:[%s5110_s29 + $0x2d0] sm:$0xff]  ;;  %v4461_v63 = vcombine.low %v494_v48, %v498_v49 }
 0x158   : > { %3748 = vmatprep.subr.bf16.mxu0 %v4254_v60  ;;  %v486_v60 = vld [vmem:[%s5110_s29 + $0x6d0] sm:$0xff] }
 0x159   : > { %3788 = vmatpush1.bf16.msra.mxu1 %v4389_v57  ;;  %v362_v57 = vld [vmem:[%s5110_s29 + $0x2f0] sm:$0xff] }
 0x15a   : > { %3789 = vmatprep.subr.bf16.mxu1 %v4382_v61  ;;  %v490_v61 = vld [vmem:[%s5110_s29 + $0x6f0] sm:$0xff]  ;;  %v4326_v0 = vcombine.high %v358_v56, %v362_v57  ;;  %v4325_v7 = vcombine.low %v358_v56, %v362_v57 }
 0x15b   : > { %3749 = vmatpush1.bf16.msra.mxu0 %v4253_v2  ;;  %v4454_v2 = vcombine.high %v486_v60, %v490_v61  ;;  %v4453_v8 = vcombine.low %v486_v60, %v490_v61  ;;  %v338_v30 = vld [vmem:[%s5110_s29 + $0x230] sm:$0xff] }
 0x15c   : > { %3750 = vmatprep.subr.bf16.mxu0 %v4246_v4  ;;  %v354_v4 = vld [vmem:[%s5110_s29 + $0x2b0] sm:$0xff] }
 0x15d   : > { %3790 = vmatpush1.bf16.msra.mxu1 %v4381_v3  ;;  %v350_v3 = vld [vmem:[%s5110_s29 + $0x290] sm:$0xff] }
 0x15e   : > { %3791 = vmatprep.subr.bf16.mxu1 %v4374_v5  ;;  %v478_v5 = vld [vmem:[%s5110_s29 + $0x690] sm:$0xff]  ;;  %v4318_v9 = vcombine.high %v350_v3, %v354_v4  ;;  %v4317_v18 = vcombine.low %v350_v3, %v354_v4 }
 0x15f   : > { %3751 = vmatpush1.bf16.msra.mxu0 %v4245_v10  ;;  %v5514_v10 = vshrl.u32 %v782_v1, 7  ;;  %v4445_v21 = vcombine.low %v478_v5, %v482_v6  ;;  %v462_v32 = vld [vmem:[%s5110_s29 + $0x610] sm:$0xff] }
 0x160   : > { %3752 = vmatprep.subr.bf16.mxu0 %v4238_v12  ;;  %v342_v12 = vld [vmem:[%s5110_s29 + $0x250] sm:$0xff] }
 0x161   : > { %3792 = vmatpush1.bf16.msra.mxu1 %v4373_v11  ;;  %v4446_v11 = vcombine.high %v478_v5, %v482_v6  ;;  %v466_v33 = vld [vmem:[%s5110_s29 + $0x630] sm:$0xff] }
 0x162   : > { %3793 = vmatprep.subr.bf16.mxu1 %v4366_v13  ;;  %v346_v13 = vld [vmem:[%s5110_s29 + $0x270] sm:$0xff]  ;;  %v4430_v41 = vcombine.high %v462_v32, %v466_v33  ;;  %v4429_v53 = vcombine.low %v462_v32, %v466_v33 }
 0x163   : > { %3753 = vmatpush1.bf16.msra.mxu0 %v4237_v23  ;;  %v4310_v23 = vcombine.high %v342_v12, %v346_v13  ;;  %v582_v42 = vld [vmem:[%s5110_s29 + $0x9d0] sm:$0xff] }
 0x164   : > { %3754 = vmatprep.subr.bf16.mxu0 %v4358_v26  ;;  %v4438_v26 = vcombine.high %v470_v14, %v474_v15  ;;  %v586_v43 = vld [vmem:[%s5110_s29 + $0x9f0] sm:$0xff] }
 0x165   : > { %3794 = vmatpush1.bf16.msra.mxu1 %v4365_v25  ;;  %v784_v25 = vsub.s32 0, %v5514_v10  ;;  %v4550_v47 = vcombine.high %v582_v42, %v586_v43  ;;  %v4549_v57 = vcombine.low %v582_v42, %v586_v43  ;;  %v698_v3 = vld [vmem:[%s5110_s29 + $0xd70] sm:$0xff] }
 0x166   : > { %3795 = vmatprep.subr.bf16.mxu1 %v4486_v28  ;;  %v334_v28 = vld [vmem:[%s5110_s29 + $0x210] sm:$0xff] }
 0x167   : > { %3755 = vmatpush2.bf16.msra.mxu0 %v4357_v34  ;;  %v788_v34 = vsub.s32 1, %v5514_v10  ;;  %v785_v40 = vrot.slane %v5524_v31, %v784_v25 }
 0x168   : > { %3756 = vmatprep.subr.bf16.mxu0 %v4350_v37  ;;  %v4437_v37 = vcombine.low %v470_v14, %v474_v15  ;;  %v562_v14 = vld [vmem:[%s5110_s29 + $0x930] sm:$0xff] }
 0x169   : > { %3796 = vmatpush2.bf16.msra.mxu1 %v4485_v35  ;;  %v4309_v35 = vcombine.low %v342_v12, %v346_v13  ;;  %v3445_v48 = vadd.f32 %v5456_v17, %v785_v40  ;;  %v558_v13 = vld [vmem:[%s5110_s29 + $0x910] sm:$0xff] }
 0x16a   : > { %3797 = vmatprep.subr.bf16.mxu1 %v4478_v38  ;;  %v4302_v38 = vcombine.high %v334_v28, %v338_v30  ;;  %v4526_v32 = vcombine.high %v558_v13, %v562_v14  ;;  %v682_v40 = vld [vmem:[%s5110_s29 + $0xcf0] sm:$0xff] }
 0x16b   : > { %3757 = vmatpush2.bf16.msra.mxu0 %v4349_v44  ;;  %v710_v44 = vld [vmem:[%s5110_s29 + $0xdd0] sm:$0xff]  ;;  %v3486_v17 = vadd.f32 %v5461_v22, %v3445_v48 }
 0x16c   : > { %3758 = vmatprep.subr.bf16.mxu0 %v4342_v45  ;;  %v789_v45 = vrot.slane %v5524_v31, %v788_v34 }
 0x16d   : > { %3798 = vmatpush2.bf16.msra.mxu1 %v4477_v19  ;;  %v714_v19 = vld [vmem:[%s5110_s29 + $0xdf0] sm:$0xff] }
 0x16e   : > { %3799 = vmatprep.subr.bf16.mxu1 %v4470_v46  ;;  %v4301_v46 = vcombine.low %v334_v28, %v338_v30  ;;  %v4678_v49 = vcombine.high %v710_v44, %v714_v19  ;;  %v3447_v56 = vadd.f32 %v5464_v24, %v789_v45  ;;  %v4677_v60 = vcombine.low %v710_v44, %v714_v19  ;;  %v542_v19 = vld [vmem:[%s5110_s29 + $0x890] sm:$0xff] }
 0x16f   : > { %3759 = vmatpush2.bf16.msra.mxu0 %v4341_v50  ;;  %v574_v50 = vld [vmem:[%s5110_s29 + $0x990] sm:$0xff] }
 0x170   : > { %3760 = vmatprep.subr.bf16.mxu0 %v4334_v52  ;;  %v702_v52 = vld [vmem:[%s5110_s29 + $0xd90] sm:$0xff]  ;;  %v3488_v24 = vadd.f32 %v5466_v27, %v3447_v56 }
 0x171   : > { %3800 = vmatpush2.bf16.msra.mxu1 %v4469_v51  ;;  %v578_v51 = vld [vmem:[%s5110_s29 + $0x9b0] sm:$0xff] }
 0x172   : > { %3801 = vmatprep.subr.bf16.mxu1 %v4462_v55  ;;  %v706_v55 = vld [vmem:[%s5110_s29 + $0xdb0] sm:$0xff]  ;;  %v4542_v61 = vcombine.high %v574_v50, %v578_v51  ;;  %v4541_v22 = vcombine.low %v574_v50, %v578_v51 }
 0x173   : > { %3761 = vmatpush2.bf16.msra.mxu0 %v4333_v62  ;;  %v4670_v62 = vcombine.high %v702_v52, %v706_v55  ;;  %v546_v45 = vld [vmem:[%s5110_s29 + $0x8b0] sm:$0xff] }
 0x174   : > { %3762 = vmatprep.subr.bf16.mxu0 %v4326_v0  ;;  %v570_v0 = vld [vmem:[%s5110_s29 + $0x970] sm:$0xff] }
 0x175   : > { %3802 = vmatpush2.bf16.msra.mxu1 %v4461_v63  ;;  %v566_v63 = vld [vmem:[%s5110_s29 + $0x950] sm:$0xff] }
 0x176   : > { %3803 = vmatprep.subr.bf16.mxu1 %v4454_v2  ;;  %v694_v2 = vld [vmem:[%s5110_s29 + $0xd50] sm:$0xff] }
 0x177   : > { %3763 = vmatpush2.bf16.msra.mxu0 %v4325_v7  ;;  %v4669_v7 = vcombine.low %v702_v52, %v706_v55  ;;  %v4662_v27 = vcombine.high %v694_v2, %v698_v3  ;;  %v4661_v30 = vcombine.low %v694_v2, %v698_v3  ;;  %v534_v51 = vld [vmem:[%s5110_s29 + $0x850] sm:$0xff] }
 0x178   : > { %3764 = vmatprep.subr.bf16.mxu0 %v4318_v9  ;;  %v538_v52 = vld [vmem:[%s5110_s29 + $0x870] sm:$0xff] }
 0x179   : > { %3804 = vmatpush2.bf16.msra.mxu1 %v4453_v8  ;;  %v4534_v8 = vcombine.high %v566_v63, %v570_v0  ;;  %v662_v55 = vld [vmem:[%s5110_s29 + $0xc50] sm:$0xff]  ;;  %v4501_v2 = vcombine.low %v534_v51, %v538_v52 }
 0x17a   : > { %3805 = vmatprep.subr.bf16.mxu1 %v4446_v11  ;;  %v666_v56 = vld [vmem:[%s5110_s29 + $0xc70] sm:$0xff] }
 0x17b   : > { %3765 = vmatpush2.bf16.msra.mxu0 %v4317_v18  ;;  %v686_v18 = vld [vmem:[%s5110_s29 + $0xd10] sm:$0xff]  ;;  %v4629_v3 = vcombine.low %v662_v55, %v666_v56 }
 0x17c   : > { %3766 = vmatprep.subr.bf16.mxu0 %v4310_v23 }
 0x17d   : > { %3806 = vmatpush2.bf16.msra.mxu1 %v4445_v21  ;;  %v690_v21 = vld [vmem:[%s5110_s29 + $0xd30] sm:$0xff] }
 0x17e   : > { %3807 = vmatprep.subr.bf16.mxu1 %v4438_v26  ;;  %v4533_v26 = vcombine.low %v566_v63, %v570_v0  ;;  %v4654_v34 = vcombine.high %v686_v18, %v690_v21  ;;  %v4653_v42 = vcombine.low %v686_v18, %v690_v21  ;;  %v530_v63 = vld [vmem:[%s5110_s29 + $0x830] sm:$0xff] }
 0x17f   : > { %3767 = vmatpush2.bf16.msra.mxu0 %v4309_v35  ;;  %v550_v35 = vld [vmem:[%s5110_s29 + $0x8d0] sm:$0xff] }
 0x180   : > { %3768 = vmatprep.subr.bf16.mxu0 %v4302_v38  ;;  %v678_v38 = vld [vmem:[%s5110_s29 + $0xcd0] sm:$0xff] }
 0x181   : > { %3808 = vmatpush2.bf16.msra.mxu1 %v4437_v37  ;;  %v554_v37 = vld [vmem:[%s5110_s29 + $0x8f0] sm:$0xff]  ;;  %v4646_v44 = vcombine.high %v678_v38, %v682_v40  ;;  %v4645_v48 = vcombine.low %v678_v38, %v682_v40 }
 0x182   : > { %3809 = vmatprep.subr.bf16.mxu1 %v4430_v41  ;;  %v4525_v41 = vcombine.low %v558_v13, %v562_v14  ;;  %v4518_v43 = vcombine.high %v550_v35, %v554_v37  ;;  %v654_v0 = vld [vmem:[%s5110_s29 + $0xc10] sm:$0xff] }
 0x183   : > { %3769 = vmatpush2.bf16.msra.mxu0 %v4301_v46  ;;  %v670_v46 = vld [vmem:[%s5110_s29 + $0xc90] sm:$0xff] }
 0x184   : > { %3820 = vmatprep.subr.bf16.mxu0 %v4550_v47  ;;  %v4517_v47 = vcombine.low %v550_v35, %v554_v37  ;;  %v642_v13 = vld [vmem:[%s5110_s29 + $0xbb0] sm:$0xff] }
 0x185   : > { %3810 = vmatpush2.bf16.msra.mxu1 %v4429_v53  ;;  %v674_v53 = vld [vmem:[%s5110_s29 + $0xcb0] sm:$0xff] }
 0x186   : > { %3861 = vmatprep.subr.bf16.mxu1 %v4678_v49  ;;  %v3526_v1 = vpop.f32.mrf.mxu0  ;;  %3771 = vmatmul.mubr.bf16.vlgmr.msra.gmra.mxu0 %v5216_v16  ;;  %v4510_v49 = vcombine.high %v542_v19, %v546_v45  ;;  %v4638_v50 = vcombine.high %v670_v46, %v674_v53  ;;  %v766_v14 = vld [vmem:[%s5110_s29 + $0xf90] sm:$0xff] }
 0x187   : > { %v3527_v4 = vadd.f32 %v3526_v1, %v3486_v17  ;;  %3821 = vmatpush1.bf16.msra.mxu0 %v4549_v57  ;;  %3852 = vmatprep.mubr.bf16.mxu0 %v5238_v54  ;;  %v4509_v57 = vcombine.low %v542_v19, %v546_v45  ;;  %v4630_v17 = vcombine.high %v662_v55, %v666_v56  ;;  %v658_v1 = vld [vmem:[%s5110_s29 + $0xc30] sm:$0xff] }
 0x188   : > { %v3567_v5 = vpop.f32.mrf.mxu1  ;;  %3812 = vmatmul.mubr.bf16.vlgmr.msra.gmra.mxu1 %v5227_v20  ;;  %v3528_v6 = vpop.f32.mrf.mxu0  ;;  %3822 = vmatprep.subr.bf16.mxu0 %v4542_v61  ;;  %v4502_v61 = vcombine.high %v534_v51, %v538_v52  ;;  %v622_v38 = vld [vmem:[%s5110_s29 + $0xb10] sm:$0xff] }
 0x189   : > { %3862 = vmatpush1.bf16.msra.mxu1 %v4677_v60  ;;  %v3568_v9 = vadd.f32 %v3567_v5, %v3527_v4  ;;  %v3529_v11 = vadd.f32 %v3528_v6, %v3488_v24  ;;  %3893 = vmatprep.mubr.bf16.mxu1 %v5245_v29  ;;  %v4637_v60 = vcombine.low %v670_v46, %v674_v53  ;;  %v646_v5 = vld [vmem:[%s5110_s29 + $0xbd0] sm:$0xff] }
 0x18a   : > { %v3569_v12 = vpop.f32.mrf.mxu1  ;;  %3863 = vmatprep.subr.bf16.mxu1 %v4670_v62  ;;  %v3530_v15 = vpop.f32.mrf.mxu0  ;;  %v526_v62 = vld [vmem:[%s5110_s29 + $0x810] sm:$0xff]  ;;  %v4622_v4 = vcombine.high %v654_v0, %v658_v1 }
 0x18b   : > { %4066 = vst [vmem:[%s5558_s6] sm:$0xff] %v3568_v9  ;;  %v3570_v23 = vadd.f32 %v3569_v12, %v3529_v11  ;;  %3823 = vmatpush1.bf16.msra.mxu0 %v4541_v22  ;;  %v4494_v24 = vcombine.high %v526_v62, %v530_v63  ;;  %v650_v22 = vld [vmem:[%s5110_s29 + $0xbf0] sm:$0xff]  ;;  %v4621_v9 = vcombine.low %v654_v0, %v658_v1 }
 0x18c   : > { %v3571_v25 = vpop.f32.mrf.mxu1  ;;  %v3531_v28 = vpop.f32.mrf.mxu0  ;;  %3824 = vmatprep.subr.bf16.mxu0 %v4534_v8  ;;  %v774_v6 = vld [vmem:[%s5110_s29 + $0xfd0] sm:$0xff]  ;;  %v4493_v8 = vcombine.low %v526_v62, %v530_v63  ;;  %v4614_v11 = vcombine.high %v646_v5, %v650_v22  ;;  %v4613_v18 = vcombine.low %v646_v5, %v650_v22 }
 0x18d   : > { %3864 = vmatpush1.bf16.msra.mxu1 %v4669_v7  ;;  %4067 = vst [vmem:[%s5558_s6 + $0x8] sm:$0xff] %v3570_v23  ;;  %v778_v7 = vld [vmem:[%s5110_s29 + $0xff0] sm:$0xff] }
 0x18e   : > { %v3572_v33 = vpop.f32.mrf.mxu1  ;;  %3865 = vmatprep.subr.bf16.mxu1 %v4662_v27  ;;  %v4742_v12 = vcombine.high %v774_v6, %v778_v7  ;;  %v638_v27 = vld [vmem:[%s5110_s29 + $0xb90] sm:$0xff]  ;;  %v4741_v21 = vcombine.low %v774_v6, %v778_v7 }
 0x18f   : > { %3825 = vmatpush1.bf16.msra.mxu0 %v4533_v26  ;;  %v770_v15 = vld [vmem:[%s5110_s29 + $0xfb0] sm:$0xff]  ;;  %v4606_v23 = vcombine.high %v638_v27, %v642_v13  ;;  %v4605_v33 = vcombine.low %v638_v27, %v642_v13 }
 0x190   : > { %3826 = vmatprep.subr.bf16.mxu0 %v4526_v32  ;;  %v4734_v25 = vcombine.high %v766_v14, %v770_v15  ;;  %v630_v26 = vld [vmem:[%s5110_s29 + $0xb50] sm:$0xff] }
 0x191   : > { %3866 = vmatpush1.bf16.msra.mxu1 %v4661_v30  ;;  %v634_v28 = vld [vmem:[%s5110_s29 + $0xb70] sm:$0xff] }
 0x192   : > { %3867 = vmatprep.subr.bf16.mxu1 %v4654_v34  ;;  %v758_v30 = vld [vmem:[%s5110_s29 + $0xf50] sm:$0xff]  ;;  %v4733_v34 = vcombine.low %v766_v14, %v770_v15  ;;  %v4598_v35 = vcombine.high %v630_v26, %v634_v28  ;;  %v327_v14 = vld [vmem:[%s5110_s29 + $0x1d8] sm:$0xff] }
 0x193   : > { %3827 = vmatpush1.bf16.msra.mxu0 %v4525_v41  ;;  %v762_v32 = vld [vmem:[%s5110_s29 + $0xf70] sm:$0xff]  ;;  %v331_v15 = vld [vmem:[%s5110_s29 + $0x1f8] sm:$0xff] }
 0x194   : > { %3828 = vmatprep.subr.bf16.mxu0 %v4518_v43  ;;  %v4726_v37 = vcombine.high %v758_v30, %v762_v32  ;;  %v626_v40 = vld [vmem:[%s5110_s29 + $0xb30] sm:$0xff]  ;;  %v4597_v43 = vcombine.low %v630_v26, %v634_v28  ;;  %v4296_v26 = vcombine.high %v327_v14, %v331_v15 }
 0x195   : > { %3868 = vmatpush1.bf16.msra.mxu1 %v4653_v42  ;;  %v750_v41 = vld [vmem:[%s5110_s29 + $0xf10] sm:$0xff]  ;;  %v4590_v19 = vcombine.high %v622_v38, %v626_v40 }
 0x196   : > { %3869 = vmatprep.subr.bf16.mxu1 %v4646_v44  ;;  %v754_v42 = vld [vmem:[%s5110_s29 + $0xf30] sm:$0xff]  ;;  %v4725_v44 = vcombine.low %v758_v30, %v762_v32  ;;  %v319_v30 = vld [vmem:[%s5110_s29 + $0x198] sm:$0xff] }
 0x197   : > { %3829 = vmatpush1.bf16.msra.mxu0 %v4517_v47  ;;  %v4718_v45 = vcombine.high %v750_v41, %v754_v42  ;;  %v614_v46 = vld [vmem:[%s5110_s29 + $0xad0] sm:$0xff]  ;;  %v323_v32 = vld [vmem:[%s5110_s29 + $0x1b8] sm:$0xff] }
 0x198   : > { %3830 = vmatprep.subr.bf16.mxu0 %v4510_v49  ;;  %v618_v53 = vld [vmem:[%s5110_s29 + $0xaf0] sm:$0xff]  ;;  %v4589_v49 = vcombine.low %v622_v38, %v626_v40  ;;  %v4288_v38 = vcombine.high %v319_v30, %v323_v32 }
 0x199   : > { %3870 = vmatpush1.bf16.msra.mxu1 %v4645_v48  ;;  %v742_v47 = vld [vmem:[%s5110_s29 + $0xed0] sm:$0xff]  ;;  %v4582_v51 = vcombine.high %v614_v46, %v618_v53 }
 0x19a   : > { %3871 = vmatprep.subr.bf16.mxu1 %v4638_v50  ;;  %v746_v48 = vld [vmem:[%s5110_s29 + $0xef0] sm:$0xff]  ;;  %v4717_v50 = vcombine.low %v750_v41, %v754_v42  ;;  %v311_v41 = vld [vmem:[%s5110_s29 + $0x158] sm:$0xff] }
 0x19b   : > { %3831 = vmatpush1.bf16.msra.mxu0 %v4509_v57  ;;  %v4710_v52 = vcombine.high %v742_v47, %v746_v48  ;;  %v606_v55 = vld [vmem:[%s5110_s29 + $0xa90] sm:$0xff]  ;;  %v315_v42 = vld [vmem:[%s5110_s29 + $0x178] sm:$0xff] }
 0x19c   : > { %3832 = vmatprep.subr.bf16.mxu0 %v4502_v61  ;;  %v610_v56 = vld [vmem:[%s5110_s29 + $0xab0] sm:$0xff]  ;;  %v4581_v61 = vcombine.low %v614_v46, %v618_v53  ;;  %v4287_v46 = vcombine.low %v319_v30, %v323_v32  ;;  %v271_v30 = vld [vmem:[%s5110_s29 + $0x18] sm:$0xff] }
 0x19d   : > { %3872 = vmatpush1.bf16.msra.mxu1 %v4637_v60  ;;  %v734_v57 = vld [vmem:[%s5110_s29 + $0xe90] sm:$0xff]  ;;  %v4574_v62 = vcombine.high %v606_v55, %v610_v56  ;;  %v275_v32 = vld [vmem:[%s5110_s29 + $0x38] sm:$0xff] }
 0x19e   : > { %3873 = vmatprep.subr.bf16.mxu1 %v4630_v17  ;;  %v738_v60 = vld [vmem:[%s5110_s29 + $0xeb0] sm:$0xff]  ;;  %v4709_v17 = vcombine.low %v742_v47, %v746_v48  ;;  %v4280_v48 = vcombine.high %v311_v41, %v315_v42 }
 0x19f   : > { %3833 = vmatpush1.bf16.msra.mxu0 %v4501_v2  ;;  %v4702_v63 = vcombine.high %v734_v57, %v738_v60  ;;  %v598_v0 = vld [vmem:[%s5110_s29 + $0xa50] sm:$0xff] }
 0x1a0   : > { %3834 = vmatprep.subr.bf16.mxu0 %v4494_v24  ;;  %v602_v1 = vld [vmem:[%s5110_s29 + $0xa70] sm:$0xff]  ;;  %v4573_v24 = vcombine.low %v606_v55, %v610_v56  ;;  %v431_v56 = vld [vmem:[%s5110_s29 + $0x518] sm:$0xff] }
 0x1a1   : > { %3874 = vmatpush1.bf16.msra.mxu1 %v4629_v3  ;;  %v726_v2 = vld [vmem:[%s5110_s29 + $0xe50] sm:$0xff]  ;;  %v4566_v5 = vcombine.high %v598_v0, %v602_v1 }
 0x1a2   : > { %3875 = vmatprep.subr.bf16.mxu1 %v4622_v4  ;;  %v730_v3 = vld [vmem:[%s5110_s29 + $0xe70] sm:$0xff]  ;;  %v4701_v4 = vcombine.low %v734_v57, %v738_v60  ;;  %v435_v57 = vld [vmem:[%s5110_s29 + $0x538] sm:$0xff] }
 0x1a3   : > { %3835 = vmatpush1.bf16.msra.mxu0 %v4493_v8  ;;  %v4694_v22 = vcombine.high %v726_v2, %v730_v3  ;;  %v590_v6 = vld [vmem:[%s5110_s29 + $0xa10] sm:$0xff] }
 0x1a4   : > { %3836 = vmatprep.subr.bf16.mxu0 %v4614_v11  ;;  %v594_v7 = vld [vmem:[%s5110_s29 + $0xa30] sm:$0xff]  ;;  %v4565_v11 = vcombine.low %v598_v0, %v602_v1  ;;  %v295_v1 = vld [vmem:[%s5110_s29 + $0xd8] sm:$0xff] }
 0x1a5   : > { %3876 = vmatpush1.bf16.msra.mxu1 %v4621_v9  ;;  %v718_v8 = vld [vmem:[%s5110_s29 + $0xe10] sm:$0xff]  ;;  %v4558_v27 = vcombine.high %v590_v6, %v594_v7 }
 0x1a6   : > { %3877 = vmatprep.subr.bf16.mxu1 %v4742_v12  ;;  %v722_v9 = vld [vmem:[%s5110_s29 + $0xe30] sm:$0xff]  ;;  %v4693_v12 = vcombine.low %v726_v2, %v730_v3  ;;  %v299_v2 = vld [vmem:[%s5110_s29 + $0xf8] sm:$0xff] }
 0x1a7   : > { %3837 = vmatpush2.bf16.msra.mxu0 %v4613_v18  ;;  %v4686_v13 = vcombine.high %v718_v8, %v722_v9  ;;  %v455_v18 = vld [vmem:[%s5110_s29 + $0x5d8] sm:$0xff] }
 0x1a8   : > { %3838 = vmatprep.subr.bf16.mxu0 %v4606_v23  ;;  %v4557_v23 = vcombine.low %v590_v6, %v594_v7  ;;  %v423_v3 = vld [vmem:[%s5110_s29 + $0x4d8] sm:$0xff] }
 0x1a9   : > { %3878 = vmatpush2.bf16.msra.mxu1 %v4741_v21  ;;  %v459_v21 = vld [vmem:[%s5110_s29 + $0x5f8] sm:$0xff] }
 0x1aa   : > { %3879 = vmatprep.subr.bf16.mxu1 %v4734_v25  ;;  %v4685_v25 = vcombine.low %v718_v8, %v722_v9  ;;  %v4424_v28 = vcombine.high %v455_v18, %v459_v21  ;;  %v287_v6 = vld [vmem:[%s5110_s29 + $0x98] sm:$0xff] }
 0x1ab   : > { %3839 = vmatpush2.bf16.msra.mxu0 %v4605_v33  ;;  %v447_v33 = vld [vmem:[%s5110_s29 + $0x598] sm:$0xff] }
 0x1ac   : > { %3840 = vmatprep.subr.bf16.mxu0 %v4598_v35  ;;  %v4295_v35 = vcombine.low %v327_v14, %v331_v15  ;;  %v291_v7 = vld [vmem:[%s5110_s29 + $0xb8] sm:$0xff] }
 0x1ad   : > { %3880 = vmatpush2.bf16.msra.mxu1 %v4733_v34  ;;  %v451_v34 = vld [vmem:[%s5110_s29 + $0x5b8] sm:$0xff] }
 0x1ae   : > { %3881 = vmatprep.subr.bf16.mxu1 %v4726_v37  ;;  %v4423_v37 = vcombine.low %v455_v18, %v459_v21  ;;  %v4416_v40 = vcombine.high %v447_v33, %v451_v34  ;;  %v4415_v47 = vcombine.low %v447_v33, %v451_v34  ;;  %v415_v8 = vld [vmem:[%s5110_s29 + $0x498] sm:$0xff] }
 0x1af   : > { %3841 = vmatpush2.bf16.msra.mxu0 %v4597_v43  ;;  %v419_v9 = vld [vmem:[%s5110_s29 + $0x4b8] sm:$0xff] }
 0x1b0   : > { %3842 = vmatprep.subr.bf16.mxu0 %v4590_v19  ;;  %v443_v19 = vld [vmem:[%s5110_s29 + $0x578] sm:$0xff] }
 0x1b1   : > { %3882 = vmatpush2.bf16.msra.mxu1 %v4725_v44  ;;  %v439_v44 = vld [vmem:[%s5110_s29 + $0x558] sm:$0xff] }
 0x1b2   : > { %3883 = vmatprep.subr.bf16.mxu1 %v4718_v45  ;;  %v279_v14 = vld [vmem:[%s5110_s29 + $0x58] sm:$0xff] }
 0x1b3   : > { %3843 = vmatpush2.bf16.msra.mxu0 %v4589_v49  ;;  %v283_v15 = vld [vmem:[%s5110_s29 + $0x78] sm:$0xff] }
 0x1b4   : > { %3844 = vmatprep.subr.bf16.mxu0 %v4582_v51  ;;  %v303_v51 = vld [vmem:[%s5110_s29 + $0x118] sm:$0xff] }
 0x1b5   : > { %3884 = vmatpush2.bf16.msra.mxu1 %v4717_v50  ;;  %v4408_v50 = vcombine.high %v439_v44, %v443_v19  ;;  %v407_v18 = vld [vmem:[%s5110_s29 + $0x458] sm:$0xff] }
 0x1b6   : > { %3885 = vmatprep.subr.bf16.mxu1 %v4710_v52  ;;  %v307_v52 = vld [vmem:[%s5110_s29 + $0x138] sm:$0xff] }
 0x1b7   : > { %3845 = vmatpush2.bf16.msra.mxu0 %v4581_v61  ;;  %v4279_v61 = vcombine.low %v311_v41, %v315_v42  ;;  %v411_v21 = vld [vmem:[%s5110_s29 + $0x478] sm:$0xff] }
 0x1b8   : > { %3846 = vmatprep.subr.bf16.mxu0 %v4574_v62  ;;  %v4407_v62 = vcombine.low %v439_v44, %v443_v19  ;;  %v399_v33 = vld [vmem:[%s5110_s29 + $0x418] sm:$0xff] }
 0x1b9   : > { %3886 = vmatpush2.bf16.msra.mxu1 %v4709_v17  ;;  %v403_v34 = vld [vmem:[%s5110_s29 + $0x438] sm:$0xff] }
 0x1ba   : > { %3887 = vmatprep.subr.bf16.mxu1 %v4702_v63  ;;  %v4272_v63 = vcombine.high %v303_v51, %v307_v52  ;;  %v391_v41 = vld [vmem:[%s5110_s29 + $0x3d8] sm:$0xff] }
 0x1bb   : > { %3847 = vmatpush2.bf16.msra.mxu0 %v4573_v24  ;;  %v427_v24 = vld [vmem:[%s5110_s29 + $0x4f8] sm:$0xff] }
 0x1bc   : > { %3848 = vmatprep.subr.bf16.mxu0 %v4566_v5  ;;  %v4264_v5 = vcombine.high %v295_v1, %v299_v2  ;;  %v395_v42 = vld [vmem:[%s5110_s29 + $0x3f8] sm:$0xff] }
 0x1bd   : > { %3888 = vmatpush2.bf16.msra.mxu1 %v4701_v4  ;;  %v4399_v4 = vcombine.low %v431_v56, %v435_v57  ;;  %v519_v44 = vld [vmem:[%s5110_s29 + $0x7d8] sm:$0xff] }
 0x1be   : > { %3889 = vmatprep.subr.bf16.mxu1 %v4694_v22  ;;  %v4392_v22 = vcombine.high %v423_v3, %v427_v24  ;;  %v523_v19 = vld [vmem:[%s5110_s29 + $0x7f8] sm:$0xff] }
 0x1bf   : > { %3849 = vmatpush2.bf16.msra.mxu0 %v4565_v11  ;;  %v4263_v11 = vcombine.low %v295_v1, %v299_v2 }
 0x1c0   : > { %3850 = vmatprep.subr.bf16.mxu0 %v4558_v27  ;;  %v4256_v27 = vcombine.high %v287_v6, %v291_v7 }
 0x1c1   : > { %3890 = vmatpush2.bf16.msra.mxu1 %v4693_v12  ;;  %v4391_v12 = vcombine.low %v423_v3, %v427_v24 }
 0x1c2   : > { %3891 = vmatprep.subr.bf16.mxu1 %v4686_v13  ;;  %v4384_v13 = vcombine.high %v415_v8, %v419_v9 }
 0x1c3   : > { %3851 = vmatpush2.bf16.msra.mxu0 %v4557_v23  ;;  %v4255_v23 = vcombine.low %v287_v6, %v291_v7 }
 0x1c4   : > { %3902 = vmatprep.subr.bf16.mxu0 %v4296_v26  ;;  %v4248_v26 = vcombine.high %v279_v14, %v283_v15 }
 0x1c5   : > { %3892 = vmatpush2.bf16.msra.mxu1 %v4685_v25  ;;  %v4383_v25 = vcombine.low %v415_v8, %v419_v9 }
 0x1c6   : > { %3943 = vmatprep.subr.bf16.mxu1 %v4424_v28  ;;  %v5620_v43 = vpop.f32.mrf.mxu0  ;;  %3853 = vmatmul.mubr.bf16.vlgmr.msra.gmra.mxu0 %v5310_v36  ;;  %v4376_v28 = vcombine.high %v407_v18, %v411_v21 }
 0x1c7   : > { %3903 = vmatpush1.bf16.msra.mxu0 %v4295_v35  ;;  %3934 = vmatprep.mubr.bf16.mxu0 %v5166_v58  ;;  %v4400_v58 = vcombine.high %v431_v56, %v435_v57  ;;  %v4247_v35 = vcombine.low %v279_v14, %v283_v15  ;;  %v515_v56 = vld [vmem:[%s5110_s29 + $0x7b8] sm:$0xff]  ;;  %v4359_v57 = vcombine.low %v391_v41, %v395_v42 }
 0x1c8   : > { %v5625_v45 = vpop.f32.mrf.mxu1  ;;  %3894 = vmatmul.mubr.bf16.vlgmr.msra.gmra.mxu1 %v5316_v39  ;;  %v5628_v53 = vpop.f32.mrf.mxu0  ;;  %3904 = vmatprep.subr.bf16.mxu0 %v4288_v38  ;;  %v4240_v38 = vcombine.high %v271_v30, %v275_v32 }
 0x1c9   : > { %3944 = vmatpush1.bf16.msra.mxu1 %v4423_v37  ;;  %3975 = vmatprep.mubr.bf16.mxu1 %v5170_v59  ;;  %v4271_v59 = vcombine.low %v303_v51, %v307_v52  ;;  %v4375_v37 = vcombine.low %v407_v18, %v411_v21  ;;  %v383_v51 = vld [vmem:[%s5110_s29 + $0x398] sm:$0xff] }
 0x1ca   : > { %v5630_v49 = vpop.f32.mrf.mxu1  ;;  %3945 = vmatprep.subr.bf16.mxu1 %v4416_v40  ;;  %v3612_v55 = vpop.f32.mrf.mxu0  ;;  %v4368_v40 = vcombine.high %v399_v33, %v403_v34  ;;  %v387_v52 = vld [vmem:[%s5110_s29 + $0x3b8] sm:$0xff] }
 0x1cb   : > { %3905 = vmatpush1.bf16.msra.mxu0 %v4287_v46  ;;  %v4239_v46 = vcombine.low %v271_v30, %v275_v32  ;;  %v511_v55 = vld [vmem:[%s5110_s29 + $0x798] sm:$0xff]  ;;  %v4351_v1 = vcombine.low %v383_v51, %v387_v52 }
 0x1cc   : > { %v3653_v60 = vpop.f32.mrf.mxu1  ;;  %v3613_v17 = vpop.f32.mrf.mxu0  ;;  %3906 = vmatprep.subr.bf16.mxu0 %v4280_v48  ;;  %v4360_v48 = vcombine.high %v391_v41, %v395_v42  ;;  %v4479_v2 = vcombine.low %v511_v55, %v515_v56 }
 0x1cd   : > { %3946 = vmatpush1.bf16.msra.mxu1 %v4415_v47  ;;  %v4367_v47 = vcombine.low %v399_v33, %v403_v34  ;;  %v4487_v60 = vcombine.low %v519_v44, %v523_v19  ;;  %v4480_v17 = vcombine.high %v511_v55, %v515_v56 }
 0x1ce   : > { %v3654_v0 = vpop.f32.mrf.mxu1  ;;  %3947 = vmatprep.subr.bf16.mxu1 %v4408_v50  ;;  %v4488_v50 = vcombine.high %v519_v44, %v523_v19  ;;  %v792_v19 = vsub.s32 2, %v5514_v10 }
 0x1cf   : > { %3907 = vmatpush1.bf16.msra.mxu0 %v4279_v61  ;;  %v4352_v61 = vcombine.high %v383_v51, %v387_v52  ;;  %v503_v0 = vld [vmem:[%s5110_s29 + $0x758] sm:$0xff]  ;;  %v796_v52 = vsub.s32 3, %v5514_v10 }
 0x1d0   : > { %3908 = vmatprep.subr.bf16.mxu0 %v4272_v63  ;;  %v379_v63 = vld [vmem:[%s5110_s29 + $0x378] sm:$0xff] }
 0x1d1   : > { %3948 = vmatpush1.bf16.msra.mxu1 %v4407_v62  ;;  %v375_v62 = vld [vmem:[%s5110_s29 + $0x358] sm:$0xff] }
 0x1d2   : > { %3949 = vmatprep.subr.bf16.mxu1 %v4400_v58  ;;  %v507_v58 = vld [vmem:[%s5110_s29 + $0x778] sm:$0xff]  ;;  %v4344_v3 = vcombine.high %v375_v62, %v379_v63  ;;  %v4343_v6 = vcombine.low %v375_v62, %v379_v63 }
 0x1d3   : > { %3909 = vmatpush1.bf16.msra.mxu0 %v4271_v59  ;;  %v4472_v24 = vcombine.high %v503_v0, %v507_v58  ;;  %v367_v59 = vld [vmem:[%s5110_s29 + $0x318] sm:$0xff]  ;;  %v4471_v7 = vcombine.low %v503_v0, %v507_v58  ;;  %v797_v58 = vrot.slane %v5524_v31, %v796_v52 }
 0x1d4   : > { %3910 = vmatprep.subr.bf16.mxu0 %v4264_v5  ;;  %v495_v5 = vld [vmem:[%s5110_s29 + $0x718] sm:$0xff] }
 0x1d5   : > { %3950 = vmatpush1.bf16.msra.mxu1 %v4399_v4  ;;  %v371_v4 = vld [vmem:[%s5110_s29 + $0x338] sm:$0xff] }
 0x1d6   : > { %3951 = vmatprep.subr.bf16.mxu1 %v4392_v22  ;;  %v499_v22 = vld [vmem:[%s5110_s29 + $0x738] sm:$0xff]  ;;  %v4336_v8 = vcombine.high %v367_v59, %v371_v4  ;;  %v4335_v14 = vcombine.low %v367_v59, %v371_v4 }
 0x1d7   : > { %3911 = vmatpush1.bf16.msra.mxu0 %v4263_v11  ;;  %v4464_v9 = vcombine.high %v495_v5, %v499_v22  ;;  %v359_v11 = vld [vmem:[%s5110_s29 + $0x2d8] sm:$0xff]  ;;  %v4463_v15 = vcombine.low %v495_v5, %v499_v22 }
 0x1d8   : > { %3912 = vmatprep.subr.bf16.mxu0 %v4256_v27  ;;  %v487_v27 = vld [vmem:[%s5110_s29 + $0x6d8] sm:$0xff] }
 0x1d9   : > { %3952 = vmatpush1.bf16.msra.mxu1 %v4391_v12  ;;  %v363_v12 = vld [vmem:[%s5110_s29 + $0x2f8] sm:$0xff] }
 0x1da   : > { %3953 = vmatprep.subr.bf16.mxu1 %v4384_v13  ;;  %v491_v13 = vld [vmem:[%s5110_s29 + $0x6f8] sm:$0xff]  ;;  %v4328_v18 = vcombine.high %v359_v11, %v363_v12  ;;  %v4327_v30 = vcombine.low %v359_v11, %v363_v12 }
 0x1db   : > { %3913 = vmatpush1.bf16.msra.mxu0 %v4255_v23  ;;  %v4456_v21 = vcombine.high %v487_v27, %v491_v13  ;;  %v351_v23 = vld [vmem:[%s5110_s29 + $0x298] sm:$0xff]  ;;  %v4455_v32 = vcombine.low %v487_v27, %v491_v13 }
 0x1dc   : > { %3914 = vmatprep.subr.bf16.mxu0 %v4248_v26  ;;  %v479_v26 = vld [vmem:[%s5110_s29 + $0x698] sm:$0xff] }
 0x1dd   : > { %3954 = vmatpush1.bf16.msra.mxu1 %v4383_v25  ;;  %v355_v25 = vld [vmem:[%s5110_s29 + $0x2b8] sm:$0xff] }
 0x1de   : > { %3955 = vmatprep.subr.bf16.mxu1 %v4376_v28  ;;  %v483_v28 = vld [vmem:[%s5110_s29 + $0x6b8] sm:$0xff]  ;;  %v4320_v33 = vcombine.high %v351_v23, %v355_v25  ;;  %v4319_v41 = vcombine.low %v351_v23, %v355_v25 }
 0x1df   : > { %3915 = vmatpush1.bf16.msra.mxu0 %v4247_v35  ;;  %v4448_v34 = vcombine.high %v479_v26, %v483_v28  ;;  %v343_v35 = vld [vmem:[%s5110_s29 + $0x258] sm:$0xff]  ;;  %v4447_v42 = vcombine.low %v479_v26, %v483_v28 }
 0x1e0   : > { %3916 = vmatprep.subr.bf16.mxu0 %v4240_v38  ;;  %v471_v38 = vld [vmem:[%s5110_s29 + $0x658] sm:$0xff] }
 0x1e1   : > { %3956 = vmatpush1.bf16.msra.mxu1 %v4375_v37  ;;  %v347_v37 = vld [vmem:[%s5110_s29 + $0x278] sm:$0xff] }
 0x1e2   : > { %3957 = vmatprep.subr.bf16.mxu1 %v4368_v40  ;;  %v475_v40 = vld [vmem:[%s5110_s29 + $0x678] sm:$0xff]  ;;  %v4312_v44 = vcombine.high %v343_v35, %v347_v37  ;;  %v4311_v55 = vcombine.low %v343_v35, %v347_v37 }
 0x1e3   : > { %3917 = vmatpush1.bf16.msra.mxu0 %v4239_v46  ;;  %v4440_v46 = vcombine.high %v471_v38, %v475_v40  ;;  %v467_v51 = vld [vmem:[%s5110_s29 + $0x638] sm:$0xff]  ;;  %v4439_v56 = vcombine.low %v471_v38, %v475_v40 }
 0x1e4   : > { %3918 = vmatprep.subr.bf16.mxu0 %v4360_v48  ;;  %v339_v48 = vld [vmem:[%s5110_s29 + $0x238] sm:$0xff] }
 0x1e5   : > { %3958 = vmatpush1.bf16.msra.mxu1 %v4367_v47  ;;  %v335_v47 = vld [vmem:[%s5110_s29 + $0x218] sm:$0xff] }
 0x1e6   : > { %3959 = vmatprep.subr.bf16.mxu1 %v4488_v50  ;;  %v463_v50 = vld [vmem:[%s5110_s29 + $0x618] sm:$0xff] }
 0x1e7   : > { %3919 = vmatpush2.bf16.msra.mxu0 %v4359_v57  ;;  %v4304_v57 = vcombine.high %v335_v47, %v339_v48  ;;  %v587_v62 = vld [vmem:[%s5110_s29 + $0x9f8] sm:$0xff] }
 0x1e8   : > { %3920 = vmatprep.subr.bf16.mxu0 %v4352_v61  ;;  %v4432_v61 = vcombine.high %v463_v50, %v467_v51  ;;  %v711_v63 = vld [vmem:[%s5110_s29 + $0xdd8] sm:$0xff] }
 0x1e9   : > { %3960 = vmatpush2.bf16.msra.mxu1 %v4487_v60  ;;  %v793_v60 = vrot.slane %v5524_v31, %v792_v19  ;;  %v715_v0 = vld [vmem:[%s5110_s29 + $0xdf8] sm:$0xff]  ;;  %v3611_v31 = vadd.f32 %v5628_v53, %v797_v58 }
 0x1ea   : > { %3961 = vmatprep.subr.bf16.mxu1 %v4480_v17  ;;  %v583_v17 = vld [vmem:[%s5110_s29 + $0x9d8] sm:$0xff]  ;;  %v4680_v59 = vcombine.high %v711_v63, %v715_v0 }
 0x1eb   : > { %3921 = vmatpush2.bf16.msra.mxu0 %v4351_v1  ;;  %v4303_v1 = vcombine.low %v335_v47, %v339_v48  ;;  %v575_v4 = vld [vmem:[%s5110_s29 + $0x998] sm:$0xff] }
 0x1ec   : > { %3922 = vmatprep.subr.bf16.mxu0 %v4344_v3  ;;  %v4552_v3 = vcombine.high %v583_v17, %v587_v62  ;;  %v579_v5 = vld [vmem:[%s5110_s29 + $0x9b8] sm:$0xff] }
 0x1ed   : > { %3962 = vmatpush2.bf16.msra.mxu1 %v4479_v2  ;;  %v4431_v2 = vcombine.low %v463_v50, %v467_v51  ;;  %v703_v22 = vld [vmem:[%s5110_s29 + $0xd98] sm:$0xff] }
 0x1ee   : > { %3963 = vmatprep.subr.bf16.mxu1 %v4472_v24  ;;  %v3609_v24 = vadd.f32 %v5620_v43, %v793_v60  ;;  %v567_v12 = vld [vmem:[%s5110_s29 + $0x958] sm:$0xff] }
 0x1ef   : > { %3923 = vmatpush2.bf16.msra.mxu0 %v4343_v6  ;;  %v707_v6 = vld [vmem:[%s5110_s29 + $0xdb8] sm:$0xff] }
 0x1f0   : > { %3924 = vmatprep.subr.bf16.mxu0 %v4336_v8  ;;  %v4679_v8 = vcombine.low %v711_v63, %v715_v0  ;;  %v3650_v43 = vadd.f32 %v5625_v45, %v3609_v24  ;;  %v4672_v11 = vcombine.high %v703_v22, %v707_v6  ;;  %v571_v27 = vld [vmem:[%s5110_s29 + $0x978] sm:$0xff]  ;;  %v4543_v45 = vcombine.low %v575_v4, %v579_v5 }
 0x1f1   : > { %3964 = vmatpush2.bf16.msra.mxu1 %v4471_v7  ;;  %v4551_v7 = vcombine.low %v583_v17, %v587_v62  ;;  %v4671_v25 = vcombine.low %v703_v22, %v707_v6  ;;  %v691_v35 = vld [vmem:[%s5110_s29 + $0xd38] sm:$0xff]  ;;  %v4535_v40 = vcombine.low %v567_v12, %v571_v27 }
 0x1f2   : > { %3965 = vmatprep.subr.bf16.mxu1 %v4464_v9  ;;  %v4544_v9 = vcombine.high %v575_v4, %v579_v5  ;;  %v551_v19 = vld [vmem:[%s5110_s29 + $0x8d8] sm:$0xff] }
 0x1f3   : > { %3925 = vmatpush2.bf16.msra.mxu0 %v4335_v14  ;;  %v695_v14 = vld [vmem:[%s5110_s29 + $0xd58] sm:$0xff] }
 0x1f4   : > { %3926 = vmatprep.subr.bf16.mxu0 %v4328_v18  ;;  %v3652_v18 = vadd.f32 %v5630_v49, %v3611_v31  ;;  %v679_v47 = vld [vmem:[%s5110_s29 + $0xcd8] sm:$0xff] }
 0x1f5   : > { %3966 = vmatpush2.bf16.msra.mxu1 %v4463_v15  ;;  %v699_v15 = vld [vmem:[%s5110_s29 + $0xd78] sm:$0xff] }
 0x1f6   : > { %3967 = vmatprep.subr.bf16.mxu1 %v4456_v21  ;;  %v4664_v49 = vcombine.high %v695_v14, %v699_v15  ;;  %v683_v48 = vld [vmem:[%s5110_s29 + $0xcf8] sm:$0xff] }
 0x1f7   : > { %3927 = vmatpush2.bf16.msra.mxu0 %v4327_v30  ;;  %v671_v60 = vld [vmem:[%s5110_s29 + $0xc98] sm:$0xff]  ;;  %v4647_v62 = vcombine.low %v679_v47, %v683_v48 }
 0x1f8   : > { %3928 = vmatprep.subr.bf16.mxu0 %v4320_v33  ;;  %v563_v33 = vld [vmem:[%s5110_s29 + $0x938] sm:$0xff] }
 0x1f9   : > { %3968 = vmatpush2.bf16.msra.mxu1 %v4455_v32  ;;  %v559_v32 = vld [vmem:[%s5110_s29 + $0x918] sm:$0xff] }
 0x1fa   : > { %3969 = vmatprep.subr.bf16.mxu1 %v4448_v34  ;;  %v687_v34 = vld [vmem:[%s5110_s29 + $0xd18] sm:$0xff]  ;;  %v4527_v50 = vcombine.low %v559_v32, %v563_v33 }
 0x1fb   : > { %3929 = vmatpush2.bf16.msra.mxu0 %v4319_v41  ;;  %v4655_v51 = vcombine.low %v687_v34, %v691_v35  ;;  %v535_v58 = vld [vmem:[%s5110_s29 + $0x858] sm:$0xff] }
 0x1fc   : > { %3930 = vmatprep.subr.bf16.mxu0 %v4312_v44  ;;  %v4528_v44 = vcombine.high %v559_v32, %v563_v33  ;;  %v527_v22 = vld [vmem:[%s5110_s29 + $0x818] sm:$0xff] }
 0x1fd   : > { %3970 = vmatpush2.bf16.msra.mxu1 %v4447_v42  ;;  %v4663_v42 = vcombine.low %v695_v14, %v699_v15  ;;  %v531_v6 = vld [vmem:[%s5110_s29 + $0x838] sm:$0xff] }
 0x1fe   : > { %3971 = vmatprep.subr.bf16.mxu1 %v4440_v46  ;;  %v555_v46 = vld [vmem:[%s5110_s29 + $0x8f8] sm:$0xff]  ;;  %v4495_v15 = vcombine.low %v527_v22, %v531_v6 }
 0x1ff   : > { %3931 = vmatpush2.bf16.msra.mxu0 %v4311_v55  ;;  %v4520_v52 = vcombine.high %v551_v19, %v555_v46  ;;  %v4648_v55 = vcombine.high %v679_v47, %v683_v48  ;;  %v4519_v17 = vcombine.low %v551_v19, %v555_v46  ;;  %v655_v31 = vld [vmem:[%s5110_s29 + $0xc18] sm:$0xff] }
 0x200   : > { %3932 = vmatprep.subr.bf16.mxu0 %v4304_v57  ;;  %v547_v57 = vld [vmem:[%s5110_s29 + $0x8b8] sm:$0xff] }
 0x201   : > { %3972 = vmatpush2.bf16.msra.mxu1 %v4439_v56  ;;  %v543_v56 = vld [vmem:[%s5110_s29 + $0x898] sm:$0xff] }
 0x202   : > { %3973 = vmatprep.subr.bf16.mxu1 %v4432_v61  ;;  %v675_v61 = vld [vmem:[%s5110_s29 + $0xcb8] sm:$0xff]  ;;  %v4512_v63 = vcombine.high %v543_v56, %v547_v57  ;;  %v4511_v24 = vcombine.low %v543_v56, %v547_v57 }
 0x203   : > { %3933 = vmatpush2.bf16.msra.mxu0 %v4303_v1  ;;  %v4640_v0 = vcombine.high %v671_v60, %v675_v61  ;;  %v539_v1 = vld [vmem:[%s5110_s29 + $0x878] sm:$0xff] }
 0x204   : > { %3984 = vmatprep.subr.bf16.mxu0 %v4552_v3  ;;  %v667_v3 = vld [vmem:[%s5110_s29 + $0xc78] sm:$0xff]  ;;  %v4504_v4 = vcombine.high %v535_v58, %v539_v1 }
 0x205   : > { %3974 = vmatpush2.bf16.msra.mxu1 %v4431_v2  ;;  %v663_v2 = vld [vmem:[%s5110_s29 + $0xc58] sm:$0xff] }
 0x206   : > { %4025 = vmatprep.subr.bf16.mxu1 %v4680_v59  ;;  %v3690_v13 = vpop.f32.mrf.mxu0  ;;  %3935 = vmatmul.mubr.bf16.vlgmr.msra.gmra.mxu0 %v5216_v16  ;;  %v4536_v16 = vcombine.high %v567_v12, %v571_v27  ;;  %v4639_v59 = vcombine.low %v671_v60, %v675_v61  ;;  %v4632_v5 = vcombine.high %v663_v2, %v667_v3  ;;  %v647_v12 = vld [vmem:[%s5110_s29 + $0xbd8] sm:$0xff] }
 0x207   : > { %v3691_v53 = vadd.f32 %v3690_v13, %v3650_v43  ;;  %3985 = vmatpush1.bf16.msra.mxu0 %v4551_v7  ;;  %4016 = vmatprep.mubr.bf16.mxu0 %v5238_v54  ;;  %v659_v7 = vld [vmem:[%s5110_s29 + $0xc38] sm:$0xff]  ;;  %v4496_v43 = vcombine.high %v527_v22, %v531_v6 }
 0x208   : > { %v3731_v21 = vpop.f32.mrf.mxu1  ;;  %3976 = vmatmul.mubr.bf16.vlgmr.msra.gmra.mxu1 %v5227_v20  ;;  %v3692_v23 = vpop.f32.mrf.mxu0  ;;  %3986 = vmatprep.subr.bf16.mxu0 %v4544_v9  ;;  %v4631_v9 = vcombine.low %v663_v2, %v667_v3  ;;  %v651_v27 = vld [vmem:[%s5110_s29 + $0xbf8] sm:$0xff] }
 0x209   : > { %4026 = vmatpush1.bf16.msra.mxu1 %v4679_v8  ;;  %v3732_v26 = vadd.f32 %v3731_v21, %v3691_v53  ;;  %v3693_v28 = vadd.f32 %v3692_v23, %v3652_v18  ;;  %4057 = vmatprep.mubr.bf16.mxu1 %v5245_v29  ;;  %v4656_v29 = vcombine.high %v687_v34, %v691_v35  ;;  %v775_v13 = vld [vmem:[%s5110_s29 + $0xfd8] sm:$0xff] }
 0x20a   : > { %v3733_v30 = vpop.f32.mrf.mxu1  ;;  %4027 = vmatprep.subr.bf16.mxu1 %v4672_v11  ;;  %v3694_v20 = vpop.f32.mrf.mxu0  ;;  %v4503_v8 = vcombine.low %v535_v58, %v539_v1  ;;  %v4624_v11 = vcombine.high %v655_v31, %v659_v7  ;;  %v779_v14 = vld [vmem:[%s5110_s29 + $0xff8] sm:$0xff]  ;;  %v4623_v18 = vcombine.low %v655_v31, %v659_v7  ;;  %v4616_v53 = vcombine.high %v647_v12, %v651_v27 }
 0x20b   : > { %4068 = vst [vmem:[%s5558_s6 + $0x10] sm:$0xff] %v3732_v26  ;;  %v3734_v37 = vadd.f32 %v3733_v30, %v3693_v28  ;;  %3987 = vmatpush1.bf16.msra.mxu0 %v4543_v45  ;;  %v4744_v21 = vcombine.high %v775_v13, %v779_v14  ;;  %v639_v45 = vld [vmem:[%s5110_s29 + $0xb98] sm:$0xff]  ;;  %v4615_v26 = vcombine.low %v647_v12, %v651_v27 }
 0x20c   : > { %v3735_v38 = vpop.f32.mrf.mxu1  ;;  %v3695_v41 = vpop.f32.mrf.mxu0  ;;  %3988 = vmatprep.subr.bf16.mxu0 %v4536_v16  ;;  %v643_v23 = vld [vmem:[%s5110_s29 + $0xbb8] sm:$0xff]  ;;  %v4743_v28 = vcombine.low %v775_v13, %v779_v14 }
 0x20d   : > { %4028 = vmatpush1.bf16.msra.mxu1 %v4671_v25  ;;  %4069 = vst [vmem:[%s5558_s6 + $0x18] sm:$0xff] %v3734_v37  ;;  %v767_v25 = vld [vmem:[%s5110_s29 + $0xf98] sm:$0xff]  ;;  %v4608_v30 = vcombine.high %v639_v45, %v643_v23  ;;  %v4607_v35 = vcombine.low %v639_v45, %v643_v23 }
 0x20e   : > { %v3736_v54 = vpop.f32.mrf.mxu1  ;;  %4029 = vmatprep.subr.bf16.mxu1 %v4664_v49  ;;  %v771_v16 = vld [vmem:[%s5110_s29 + $0xfb8] sm:$0xff] }
 0x20f   : > { %3989 = vmatpush1.bf16.msra.mxu0 %v4535_v40  ;;  %v4736_v49 = vcombine.high %v767_v25, %v771_v16  ;;  %v631_v32 = vld [vmem:[%s5110_s29 + $0xb58] sm:$0xff]  ;;  %v4735_v37 = vcombine.low %v767_v25, %v771_v16 }
 0x210   : > { %3990 = vmatprep.subr.bf16.mxu0 %v4528_v44  ;;  %v635_v33 = vld [vmem:[%s5110_s29 + $0xb78] sm:$0xff] }
 0x211   : > { %4030 = vmatpush1.bf16.msra.mxu1 %v4663_v42  ;;  %v759_v20 = vld [vmem:[%s5110_s29 + $0xf58] sm:$0xff]  ;;  %v4600_v38 = vcombine.high %v631_v32, %v635_v33 }
 0x212   : > { %4031 = vmatprep.subr.bf16.mxu1 %v4656_v29  ;;  %v763_v34 = vld [vmem:[%s5110_s29 + $0xf78] sm:$0xff]  ;;  %v4599_v29 = vcombine.low %v631_v32, %v635_v33 }
 0x213   : > { %3991 = vmatpush1.bf16.msra.mxu0 %v4527_v50  ;;  %v4728_v40 = vcombine.high %v759_v20, %v763_v34  ;;  %v623_v41 = vld [vmem:[%s5110_s29 + $0xb18] sm:$0xff]  ;;  %v4727_v19 = vcombine.low %v759_v20, %v763_v34 }
 0x214   : > { %3992 = vmatprep.subr.bf16.mxu0 %v4520_v52  ;;  %v627_v42 = vld [vmem:[%s5110_s29 + $0xb38] sm:$0xff] }
 0x215   : > { %4032 = vmatpush1.bf16.msra.mxu1 %v4655_v51  ;;  %v751_v44 = vld [vmem:[%s5110_s29 + $0xf18] sm:$0xff]  ;;  %v4592_v46 = vcombine.high %v623_v41, %v627_v42 }
 0x216   : > { %4033 = vmatprep.subr.bf16.mxu1 %v4648_v55  ;;  %v755_v54 = vld [vmem:[%s5110_s29 + $0xf38] sm:$0xff]  ;;  %v4591_v55 = vcombine.low %v623_v41, %v627_v42 }
 0x217   : > { %3993 = vmatpush1.bf16.msra.mxu0 %v4519_v17  ;;  %v4720_v47 = vcombine.high %v751_v44, %v755_v54  ;;  %v615_v48 = vld [vmem:[%s5110_s29 + $0xad8] sm:$0xff]  ;;  %v4719_v56 = vcombine.low %v751_v44, %v755_v54 }
 0x218   : > { %3994 = vmatprep.subr.bf16.mxu0 %v4512_v63  ;;  %v619_v50 = vld [vmem:[%s5110_s29 + $0xaf8] sm:$0xff] }
 0x219   : > { %4034 = vmatpush1.bf16.msra.mxu1 %v4647_v62  ;;  %v743_v51 = vld [vmem:[%s5110_s29 + $0xed8] sm:$0xff]  ;;  %v4584_v57 = vcombine.high %v615_v48, %v619_v50 }
 0x21a   : > { %4035 = vmatprep.subr.bf16.mxu1 %v4640_v0  ;;  %v747_v52 = vld [vmem:[%s5110_s29 + $0xef8] sm:$0xff]  ;;  %v4583_v0 = vcombine.low %v615_v48, %v619_v50 }
 0x21b   : > { %3995 = vmatpush1.bf16.msra.mxu0 %v4511_v24  ;;  %v4712_v60 = vcombine.high %v743_v51, %v747_v52  ;;  %v607_v61 = vld [vmem:[%s5110_s29 + $0xa98] sm:$0xff]  ;;  %v4711_v58 = vcombine.low %v743_v51, %v747_v52 }
 0x21c   : > { %3996 = vmatprep.subr.bf16.mxu0 %v4504_v4  ;;  %v611_v17 = vld [vmem:[%s5110_s29 + $0xab8] sm:$0xff] }
 0x21d   : > { %4036 = vmatpush1.bf16.msra.mxu1 %v4639_v59  ;;  %v735_v62 = vld [vmem:[%s5110_s29 + $0xe98] sm:$0xff]  ;;  %v4576_v1 = vcombine.high %v607_v61, %v611_v17 }
 0x21e   : > { %4037 = vmatprep.subr.bf16.mxu1 %v4632_v5  ;;  %v739_v63 = vld [vmem:[%s5110_s29 + $0xeb8] sm:$0xff]  ;;  %v4575_v5 = vcombine.low %v607_v61, %v611_v17  ;;  %v808_v61 = vsub.s32 6, %v5514_v10  ;;  %v812_v17 = vsub.s32 7, %v5514_v10 }
 0x21f   : > { %3997 = vmatpush1.bf16.msra.mxu0 %v4503_v8  ;;  %v4704_v2 = vcombine.high %v735_v62, %v739_v63  ;;  %v599_v3 = vld [vmem:[%s5110_s29 + $0xa58] sm:$0xff]  ;;  %v4703_v22 = vcombine.low %v735_v62, %v739_v63 }
 0x220   : > { %3998 = vmatprep.subr.bf16.mxu0 %v4496_v43  ;;  %v603_v24 = vld [vmem:[%s5110_s29 + $0xa78] sm:$0xff] }
 0x221   : > { %4038 = vmatpush1.bf16.msra.mxu1 %v4631_v9  ;;  %v727_v59 = vld [vmem:[%s5110_s29 + $0xe58] sm:$0xff]  ;;  %v4568_v6 = vcombine.high %v599_v3, %v603_v24 }
 0x222   : > { %4039 = vmatprep.subr.bf16.mxu1 %v4624_v11  ;;  %v731_v4 = vld [vmem:[%s5110_s29 + $0xe78] sm:$0xff]  ;;  %v4567_v11 = vcombine.low %v599_v3, %v603_v24 }
 0x223   : > { %3999 = vmatpush1.bf16.msra.mxu0 %v4495_v15  ;;  %v4696_v31 = vcombine.high %v727_v59, %v731_v4  ;;  %v591_v7 = vld [vmem:[%s5110_s29 + $0xa18] sm:$0xff]  ;;  %v4695_v12 = vcombine.low %v727_v59, %v731_v4 }
 0x224   : > { %4000 = vmatprep.subr.bf16.mxu0 %v4616_v53  ;;  %v595_v8 = vld [vmem:[%s5110_s29 + $0xa38] sm:$0xff] }
 0x225   : > { %4040 = vmatpush1.bf16.msra.mxu1 %v4623_v18  ;;  %v719_v9 = vld [vmem:[%s5110_s29 + $0xe18] sm:$0xff]  ;;  %v4560_v27 = vcombine.high %v591_v7, %v595_v8  ;;  %v4559_v14 = vcombine.low %v591_v7, %v595_v8 }
 0x226   : > { %4041 = vmatprep.subr.bf16.mxu1 %v4744_v21  ;;  %v723_v43 = vld [vmem:[%s5110_s29 + $0xe38] sm:$0xff]  ;;  %s5779_s29 = scalar_lea.hbm %s5831_s3, %s4752_s8 }
 0x227   : > { %4001 = vmatpush2.bf16.msra.mxu0 %v4615_v26  ;;  %v4688_v13 = vcombine.high %v719_v9, %v723_v43  ;;  %v4687_v15 = vcombine.low %v719_v9, %v723_v43 }
 0x228   : > { %4002 = vmatprep.subr.bf16.mxu0 %v4608_v30  ;;  %v804_v30 = vsub.s32 5, %v5514_v10 }
 0x229   : > { %4042 = vmatpush2.bf16.msra.mxu1 %v4743_v28  ;;  %v800_v28 = vsub.s32 4, %v5514_v10 }
 0x22a   : > { %4043 = vmatprep.subr.bf16.mxu1 %v4736_v49  ;;  %v4831_v49 = vld [vmem:[%s5118_s9] sm:$0xff]  ;;  %s4892_s9 = sshll.u32 %s4979_s20, 4  ;;  %s4893_s9 = int_to_ptr.vmem [resolvable:$false] %s4892_s9 }
 0x22b   : > { %4003 = vmatpush2.bf16.msra.mxu0 %v4607_v35  ;;  %v801_v32 = vrot.slane %v4831_v49, %v800_v28  ;;  %v805_v33 = vrot.slane %v4831_v49, %v804_v30  ;;  %v809_v62 = vrot.slane %v4831_v49, %v808_v61  ;;  %v813_v63 = vrot.slane %v4831_v49, %v812_v17  ;;  %s4894_s24 = scalar_lea.vmem %s4893_s9, 2048  ;;  %p4895_p3 = scmp.lt.s32.totalorder %s5781_s10, %s4893_s9 }
 0x22c   : > { %4004 = vmatprep.subr.bf16.mxu0 %v4600_v38  ;;  %p4896_p5 = scmp.lt.s32.totalorder %s4894_s24, %s4888_s1 }
 0x22d   : > { %4044 = vmatpush2.bf16.msra.mxu1 %v4735_v37 }
 0x22e   : > { %4045 = vmatprep.subr.bf16.mxu1 %v4728_v40  ;;  %p4897_p6 = por %p4896_p5, %p4895_p3 }
 0x22f   : > { %4005 = vmatpush2.bf16.msra.mxu0 %v4599_v29 }
 0x230   : > { %4006 = vmatprep.subr.bf16.mxu0 %v4592_v46  ;;  %p4898_p4 = pnand %p4897_p6, %p4891_p1 }
 0x231   : > { %4046 = vmatpush2.bf16.msra.mxu1 %v4727_v19 }
 0x232   : > { %4047 = vmatprep.subr.bf16.mxu1 %v4720_v47 }
 0x233   : > { %4007 = vmatpush2.bf16.msra.mxu0 %v4591_v55 }
 0x234   : > { %4008 = vmatprep.subr.bf16.mxu0 %v4584_v57 }
 0x235   : > { %4048 = vmatpush2.bf16.msra.mxu1 %v4719_v56 }
 0x236   : > { %4049 = vmatprep.subr.bf16.mxu1 %v4712_v60 }
 0x237   : > { %4009 = vmatpush2.bf16.msra.mxu0 %v4583_v0 }
 0x238   : > { %4010 = vmatprep.subr.bf16.mxu0 %v4576_v1 }
 0x239   : > { %4050 = vmatpush2.bf16.msra.mxu1 %v4711_v58 }
 0x23a   : > { %4051 = vmatprep.subr.bf16.mxu1 %v4704_v2 }
 0x23b   : > { %4011 = vmatpush2.bf16.msra.mxu0 %v4575_v5 }
 0x23c   : > { %4012 = vmatprep.subr.bf16.mxu0 %v4568_v6 }
 0x23d   : > { %4052 = vmatpush2.bf16.msra.mxu1 %v4703_v22 }
 0x23e   : > { %4053 = vmatprep.subr.bf16.mxu1 %v4696_v31 }
 0x23f   : > { %4013 = vmatpush2.bf16.msra.mxu0 %v4567_v11 }
 0x240   : > { %4014 = vmatprep.subr.bf16.mxu0 %v4560_v27 }
 0x241   : > { %4054 = vmatpush2.bf16.msra.mxu1 %v4695_v12 }
 0x242   : > { %4055 = vmatprep.subr.bf16.mxu1 %v4688_v13 }
 0x243   : > { %4015 = vmatpush2.bf16.msra.mxu0 %v4559_v14 }
 0x245   : > { %4056 = vmatpush2.bf16.msra.mxu1 %v4687_v15 }
 0x246   : > { %v3772_v18 = vpop.f32.mrf.mxu0  ;;  %4017 = vmatmul.mubr.bf16.vlgmr.msra.gmra.mxu0 %v5310_v36 }
 0x247   : > { %v3773_v20 = vadd.f32 %v3772_v18, %v801_v32 }
 0x248   : > { %v3813_v53 = vpop.f32.mrf.mxu1  ;;  %4058 = vmatmul.mubr.bf16.vlgmr.msra.gmra.mxu1 %v5316_v39  ;;  %v3774_v21 = vpop.f32.mrf.mxu0 }
 0x249   : > { %v3775_v36 = vadd.f32 %v3774_v21, %v805_v33  ;;  %v3814_v34 = vadd.f32 %v3813_v53, %v3773_v20 }
 0x24a   : > { %v3815_v45 = vpop.f32.mrf.mxu1  ;;  %v3776_v23 = vpop.f32.mrf.mxu0 }
 0x24b   : > { %v3816_v39 = vadd.f32 %v3815_v45, %v3775_v36 }
 0x24c   : > { %v3817_v25 = vpop.f32.mrf.mxu1  ;;  %v3777_v16 = vpop.f32.mrf.mxu0 }
 0x24e   : > { %v3818_v26 = vpop.f32.mrf.mxu1 }
 0x286   : > { %v3854_v35 = vpop.f32.mrf.mxu0 }
 0x287   : > { %v3855_v37 = vadd.f32 %v3854_v35, %v3814_v34 }
 0x288   : > { %v3895_v38 = vpop.f32.mrf.mxu1  ;;  %v3856_v40 = vpop.f32.mrf.mxu0 }
 0x289   : > { %v3896_v41 = vadd.f32 %v3895_v38, %v3855_v37  ;;  %v3857_v42 = vadd.f32 %v3856_v40, %v3816_v39 }
 0x28a   : > { %v3897_v44 = vpop.f32.mrf.mxu1  ;;  %v3858_v54 = vpop.f32.mrf.mxu0 }
 0x28b   : > { %4070 = vst [vmem:[%s5558_s6 + $0x20] sm:$0xff] %v3896_v41  ;;  %v3898_v29 = vadd.f32 %v3897_v44, %v3857_v42 }
 0x28c   : > { %v3899_v19 = vpop.f32.mrf.mxu1  ;;  %v3859_v46 = vpop.f32.mrf.mxu0 }
 0x28d   : > { %4071 = vst [vmem:[%s5558_s6 + $0x28] sm:$0xff] %v3898_v29 }
 0x28e   : > { %v3900_v47 = vpop.f32.mrf.mxu1 }
 0x2c6   : > { %v3936_v48 = vpop.f32.mrf.mxu0 }
 0x2c7   : > { %v3937_v0 = vadd.f32 %v3936_v48, %v809_v62 }
 0x2c8   : > { %v3977_v50 = vpop.f32.mrf.mxu1  ;;  %v3938_v51 = vpop.f32.mrf.mxu0 }
 0x2c9   : > { %v3939_v58 = vadd.f32 %v3938_v51, %v813_v63  ;;  %v3978_v1 = vadd.f32 %v3977_v50, %v3937_v0 }
 0x2ca   : > { %v3979_v52 = vpop.f32.mrf.mxu1  ;;  %v3940_v55 = vpop.f32.mrf.mxu0 }
 0x2cb   : > { %v3980_v3 = vadd.f32 %v3979_v52, %v3939_v58 }
 0x2cc   : > { %v3981_v56 = vpop.f32.mrf.mxu1  ;;  %v3941_v57 = vpop.f32.mrf.mxu0 }
 0x2ce   : > { %v3982_v60 = vpop.f32.mrf.mxu1 }
 0x306   : > { %v4018_v2 = vpop.f32.mrf.mxu0 }
 0x307   : > { %v4019_v24 = vadd.f32 %v4018_v2, %v3978_v1 }
 0x308   : > { %v4059_v59 = vpop.f32.mrf.mxu1  ;;  %v4020_v4 = vpop.f32.mrf.mxu0 }
 0x309   : > { %v4060_v5 = vadd.f32 %v4059_v59, %v4019_v24  ;;  %v4021_v22 = vadd.f32 %v4020_v4, %v3980_v3 }
 0x30a   : > { %v4061_v6 = vpop.f32.mrf.mxu1  ;;  %v4022_v10 = vpop.f32.mrf.mxu0 }
 0x30b   : > { %4072 = vst [vmem:[%s5558_s6 + $0x30] sm:$0xff] %v4060_v5  ;;  %v4062_v31 = vadd.f32 %v4061_v6, %v4021_v22 }
 0x30c   : > { %v4063_v7 = vpop.f32.mrf.mxu1  ;;  %v4023_v8 = vpop.f32.mrf.mxu0 }
 0x30d   : > { %4073 = vst [vmem:[%s5558_s6 + $0x38] sm:$0xff] %v4062_v31 }
 0x30e   : > { %v4064_v9 = vpop.f32.mrf.mxu1 }
 0x30f   : > { %4901 = shalt.err (!%p4898_p4)
}
 0x310   : > { %s4902_s30 = scalar_lea.hbm %s5779_s29, 1024  ;;  %s4906_s5 = scalar_lea.hbm %s5831_s3, 2048 }
 0x311   : > { %p4903_p7 = scmp.ne.s32.totalorder %s5779_s29, %s4902_s30  ;;  %p4907_p2 = scmp.lt.s32.totalorder %s5779_s29, %s5831_s3 }
 0x312   : > { %p4908_p8 = scmp.lt.s32.totalorder %s4906_s5, %s4902_s30 }
 0x313   : > { %p4904_p10 = pnand %p4903_p7, %p5051_p9 }
 0x314   : > { %p4909_p0 = por %p4908_p8, %p4907_p2 }
 0x315   : > { %p4905_p13 = pneg %p4904_p10 }
 0x317   : > { %p4910_p1 = pnand %p4909_p0, %p4905_p13 }
 0x319   : > { %4913 = shalt.err (!%p4910_p1)
}
 0x31a   : > { %4757 = dma.vmem_to_hbm [thread:$0]  (%p5051_p9), %s5781_s10, 1024, %s5779_s29, %s4075_s15  }
 0x31b PF: > { %s4103_s18 = sand.u32 1, %s4952_s12   ;;  %p4767_p3 = pnand %p4214_p12, %p5058_p11 }
 0x31c   : > { %s4104_s19 = scalar_lea.sflag [#allocation4], %s4103_s18 }
 0x31d   : > { %p4768_p5 = pneg %p4767_p3 }
 0x31f   : > { %4947 = dma.done.wait (%p4768_p5), %s4104_s19, 1024  }
 0x320   : > { %4949 = vsyncadd (%p4768_p5), %s4104_s19, 4294966272  ;;  %s22_s17 = sadd.s32 1, %s4972_s17   ;;  %s5842_s25 = sld [smem:[#allocation11_spill]] }
 0x321   : > { %p19_p6 = scmp.ge.s32.totalorder %s22_s17, 4   ;;  %s5843_s12 = smov %s4956_s13 }
 0x322   : > { %s5844_s13 = smov %s4960_s14  ;;  %s5845_s14 = smov %s5056_s26 }
 0x323   : > { %s5846_s15 = smov %s4968_s16  ;;  %21 = sbr.rel (!%p19_p6) target bundleno = 10 (0xa), region = 93 }
 0x326   : > { %s5847_s16 = smov %s5842_s25 }
 0x328   :  { %4109 = vsyncpa [#allocation3], 1 }
 0x329   :  { %4111 = vsyncpa [#allocation3 + $0x1], 1 }
 0x32a   :  { %4112 = vsyncpa [#allocation6], 1 }
 0x32b   :  { %4114 = vsyncpa [#allocation6 + $0x1], 1 }
 0x32c   :  { %4115 = vsyncpa [#allocation4], 1 }
 0x32d   :  { %4117 = vsyncpa [#allocation4 + $0x1], 1 }

</bundles_post_ra>
